<compile_context>
chip_gen: v6e
topology: v6e:2x2x1
jax: 0.10.0
libtpu: 0.0.40
codegen_flags: <defaults>
</compile_context>

<pallas_src>
import functools

import jax
import jax.numpy as jnp
import numpy as np
from jax.experimental import pallas as pl
from jax.experimental.pallas import tpu as pltpu

# ---- model dims (small, consistent with the module: stacked LSTM + fc(hidden->1)) ----
SEQ = 8            # sequence length
BATCH = 4          # module's batch_size
INPUT_DIM = 1      # input_dim
HIDDEN = 32        # hidden_size (tile-friendly stand-in for 50)
NUM_LAYERS = 3     # num_layers
GROUP = 128        # lanes per gate type: NUM_LAYERS*HIDDEN = 96, padded to 128
GATES = 4 * GROUP  # 512 packed gate lanes [i | f | g | o], 128 each
NSTEPS = SEQ + NUM_LAYERS - 1   # wavefront steps


def _lstm_kernel(x_ref, h0_ref, c0_ref, wbig_ref, bias_ref, wih0_ref,
                 fcw_ref, fcb_ref, out_ref, hn_ref, cn_ref):
    """Wavefront stacked-LSTM forward + final Linear, fully unrolled in VMEM/vregs.

    x_ref:   (SEQ, BATCH, 1)
    h0/c0:   (NUM_LAYERS, BATCH, HIDDEN)
    wbig:    (GROUP, GATES)  block-diagonal [W_hh(l) | W_ih(l+1)] per layer,
             gate-type-grouped columns, sigmoid columns pre-scaled by 0.5
    bias:    (1, GATES)      b_ih + b_hh, same layout/scaling
    wih0:    (1, GATES)      layer-0 W_ih row (input_dim == 1), same layout/scaling
    fcw:     (1, GROUP)      fc weights placed at the top layer's lanes, zero elsewhere
    fcb:     (1, 1)
    out:     (BATCH, 1),  hn/cn: (NUM_LAYERS, BATCH, HIDDEN)
    """
    H, L, B = HIDDEN, NUM_LAYERS, BATCH

    # Pack per-layer states along lanes: layer l lives at lanes [l*H, (l+1)*H).
    pad = jnp.zeros((B, GROUP - L * H), jnp.float32)
    h_all = jnp.concatenate([h0_ref[l] for l in range(L)] + [pad], axis=-1)  # (B, 128)
    c_all = jnp.concatenate([c0_ref[l] for l in range(L)] + [pad], axis=-1)  # (B, 128)

    bias = bias_ref[...]      # (1, GATES)
    wih0 = wih0_ref[...]      # (1, GATES)

    for s in range(NSTEPS):   # static unroll; ONE dependent matmul per wavefront step
        pre = bias
        if s < SEQ:           # layer-0 input term (INPUT_DIM == 1 -> broadcast multiply)
            pre = pre + x_ref[s] * wih0
        gates = jnp.dot(h_all, wbig_ref[...],
                        preferred_element_type=jnp.float32) + pre             # (B, 512)

        # Single tanh covers all gates: i/f/o columns were pre-scaled by 0.5 so
        # sigmoid(z) = 0.5*tanh(z/2) + 0.5; g columns are unscaled.
        t = jnp.tanh(gates)
        i_g = t[:, 0 * GROUP:1 * GROUP] * 0.5 + 0.5
        f_g = t[:, 1 * GROUP:2 * GROUP] * 0.5 + 0.5
        g_g = t[:, 2 * GROUP:3 * GROUP]
        o_g = t[:, 3 * GROUP:4 * GROUP] * 0.5 + 0.5

        c_new = f_g * c_all + i_g * g_g
        h_new = o_g * jnp.tanh(c_new)

        # Active layers at this wavefront step: l with 0 <= s - l < SEQ.
        lo = max(0, s - SEQ + 1)
        hi = min(L - 1, s)
        if lo == 0 and hi == L - 1:          # interior steps: no masking needed
            h_all, c_all = h_new, c_new
        else:                                # ramp-up / ramp-down: constant lane mask
            lane = jax.lax.broadcasted_iota(jnp.int32, (B, GROUP), 1)
            active = (lane >= lo * H) & (lane < (hi + 1) * H)
            h_all = jnp.where(active, h_new, h_all)
            c_all = jnp.where(active, c_new, c_all)

    # Unpack final states (one-time tail cost, keeps wrapper free of slice ops).
    for l in range(L):
        hn_ref[l] = h_all[:, l * H:(l + 1) * H]
        cn_ref[l] = c_all[:, l * H:(l + 1) * H]

    # fc: Linear(hidden, 1) on out[-1] of the top layer via VPU mul + lane reduce.
    out_ref[...] = (jnp.sum(h_all * fcw_ref[...], axis=-1, keepdims=True)
                    + fcb_ref[...])


def lstm_forward(x, h0, c0, params):
    """Pallas-backed equivalent of Lstm_model.forward(x, hn, cn)."""
    wbig, bias_big, wih0_big, fcw_big, fcb = params
    vmem = functools.partial(pl.BlockSpec, memory_space=pltpu.MemorySpace.VMEM)
    out_shapes = (
        jax.ShapeDtypeStruct((BATCH, 1), jnp.float32),
        jax.ShapeDtypeStruct((NUM_LAYERS, BATCH, HIDDEN), jnp.float32),
        jax.ShapeDtypeStruct((NUM_LAYERS, BATCH, HIDDEN), jnp.float32),
    )
    fn = pl.pallas_call(
        _lstm_kernel,
        out_shape=out_shapes,
        in_specs=[vmem()] * 8,
        out_specs=(vmem(), vmem(), vmem()),
    )
    return fn(x, h0, c0, wbig, bias_big, wih0_big, fcw_big, fcb)


def pack_params(raw):
    """One-time packing of raw per-layer weights into the kernel's lane layout."""
    w_ih, w_hh, b_ih, b_hh, fc_w, fc_b = raw
    H, L = HIDDEN, NUM_LAYERS
    scale = (0.5, 0.5, 1.0, 0.5)   # [i, f, g, o]; sigmoid gates pre-scaled by 0.5

    wbig = np.zeros((GROUP, GATES), np.float32)
    bias = np.zeros((1, GATES), np.float32)
    wih0 = np.zeros((1, GATES), np.float32)

    for l in range(L):
        whh_t = np.asarray(w_hh[l]).T                      # (H, 4H), cols [i|f|g|o]
        b = np.asarray(b_ih[l]) + np.asarray(b_hh[l])      # (4H,)
        wih_next_t = np.asarray(w_ih[l + 1]).T if l + 1 < L else None  # (H, 4H)
        for gi in range(4):
            col = gi * GROUP + l * H
            wbig[l * H:(l + 1) * H, col:col + H] = (
                whh_t[:, gi * H:(gi + 1) * H] * scale[gi])
            bias[0, col:col + H] = b[gi * H:(gi + 1) * H] * scale[gi]
            if wih_next_t is not None:
                coln = gi * GROUP + (l + 1) * H
                wbig[l * H:(l + 1) * H, coln:coln + H] = (
                    wih_next_t[:, gi * H:(gi + 1) * H] * scale[gi])

    wih0_t = np.asarray(w_ih[0]).T                          # (1, 4H), input_dim == 1
    for gi in range(4):
        wih0[0, gi * GROUP:gi * GROUP + H] = wih0_t[0, gi * H:(gi + 1) * H] * scale[gi]

    fcw_big = np.zeros((1, GROUP), np.float32)
    fcw_big[0, (L - 1) * H:L * H] = np.asarray(fc_w)[0]
    fcb = np.asarray(fc_b).reshape(1, 1)

    return (jnp.asarray(wbig), jnp.asarray(bias), jnp.asarray(wih0),
            jnp.asarray(fcw_big), jnp.asarray(fcb))


def init_params(key):
    """Deterministic parameter init (PyTorch-style uniform(-1/sqrt(H), 1/sqrt(H)))."""
    k = 1.0 / np.sqrt(HIDDEN)
    keys = jax.random.split(key, 4 * NUM_LAYERS + 2)
    w_ih, w_hh, b_ih, b_hh = [], [], [], []
    for l in range(NUM_LAYERS):
        in_sz = INPUT_DIM if l == 0 else HIDDEN
        w_ih.append(jax.random.uniform(keys[4 * l + 0], (4 * HIDDEN, in_sz),
                                       jnp.float32, -k, k))
        w_hh.append(jax.random.uniform(keys[4 * l + 1], (4 * HIDDEN, HIDDEN),
                                       jnp.float32, -k, k))
        b_ih.append(jax.random.uniform(keys[4 * l + 2], (4 * HIDDEN,),
                                       jnp.float32, -k, k))
        b_hh.append(jax.random.uniform(keys[4 * l + 3], (4 * HIDDEN,),
                                       jnp.float32, -k, k))
    fc_w = jax.random.uniform(keys[-2], (1, HIDDEN), jnp.float32, -k, k)
    fc_b = jax.random.uniform(keys[-1], (1,), jnp.float32, -k, k)
    raw = (w_ih, w_hh, b_ih, b_hh, fc_w, fc_b)
    return pack_params(raw), raw


def reference_forward(x, h0, c0, raw):
    """Pure-JAX reference matching torch.nn.LSTM semantics (gate order i,f,g,o)."""
    w_ih, w_hh, b_ih, b_hh, fc_w, fc_b = raw
    inp = x
    hn, cn = [], []
    for l in range(NUM_LAYERS):
        h, c = h0[l], c0[l]
        outs = []
        for t in range(SEQ):
            gates = inp[t] @ w_ih[l].T + b_ih[l] + h @ w_hh[l].T + b_hh[l]
            i = jax.nn.sigmoid(gates[:, 0 * HIDDEN:1 * HIDDEN])
            f = jax.nn.sigmoid(gates[:, 1 * HIDDEN:2 * HIDDEN])
            g = jnp.tanh(gates[:, 2 * HIDDEN:3 * HIDDEN])
            o = jax.nn.sigmoid(gates[:, 3 * HIDDEN:4 * HIDDEN])
            c = f * c + i * g
            h = o * jnp.tanh(c)
            outs.append(h)
        inp = jnp.stack(outs, axis=0)
        hn.append(h)
        cn.append(c)
    final = inp[-1] @ fc_w.T + fc_b
    return final, jnp.stack(hn), jnp.stack(cn)


if __name__ == "__main__":
    key = jax.random.PRNGKey(0)
    k_x, k_h, k_c, k_p = jax.random.split(key, 4)
    x = jax.random.normal(k_x, (SEQ, BATCH, INPUT_DIM), jnp.float32)
    # non-zero initial states so the wavefront boundary masking is exercised
    h0 = 0.1 * jax.random.normal(k_h, (NUM_LAYERS, BATCH, HIDDEN), jnp.float32)
    c0 = 0.1 * jax.random.normal(k_c, (NUM_LAYERS, BATCH, HIDDEN), jnp.float32)

    packed, raw = init_params(k_p)

    final_out, hn, cn = lstm_forward(x, h0, c0, packed)
    jax.block_until_ready((final_out, hn, cn))

    # correctness check against a pure-JAX reference
    ref_out, ref_hn, ref_cn = reference_forward(x, h0, c0, raw)
    np.testing.assert_allclose(np.asarray(final_out), np.asarray(ref_out),
                               rtol=1e-5, atol=1e-5)
    np.testing.assert_allclose(np.asarray(hn), np.asarray(ref_hn), rtol=1e-5, atol=1e-5)
    np.testing.assert_allclose(np.asarray(cn), np.asarray(ref_cn), rtol=1e-5, atol=1e-5)

    print("KERNEL_OK")
</pallas_src>

<mosaic_0001>
module attributes {stable_mosaic.version = 11 : i64} {
  func.func @_lstm_kernel(%arg0: memref<8x4x1xf32, #tpu.memory_space<vmem>>, %arg1: memref<3x4x32xf32, #tpu.memory_space<vmem>>, %arg2: memref<3x4x32xf32, #tpu.memory_space<vmem>>, %arg3: memref<128x512xf32, #tpu.memory_space<vmem>>, %arg4: memref<1x512xf32, #tpu.memory_space<vmem>>, %arg5: memref<1x512xf32, #tpu.memory_space<vmem>>, %arg6: memref<1x128xf32, #tpu.memory_space<vmem>>, %arg7: memref<1x1xf32, #tpu.memory_space<vmem>>, %arg8: memref<4x1xf32, #tpu.memory_space<vmem>>, %arg9: memref<3x4x32xf32, #tpu.memory_space<vmem>>, %arg10: memref<3x4x32xf32, #tpu.memory_space<vmem>>) attributes {dimension_semantics = [], scalar_prefetch = 0 : i64, scratch_operands = 0 : i64, tpu.core_type = #tpu.core_type<tc>} {
    %cst = arith.constant 0.000000e+00 : f32
    %0 = vector.broadcast %cst : f32 to vector<4x32xf32>
    %c0 = arith.constant 0 : index
    %c0_0 = arith.constant 0 : index
    %c0_1 = arith.constant 0 : index
    %1 = vector.load %arg1[%c0, %c0_0, %c0_1] : memref<3x4x32xf32, #tpu.memory_space<vmem>>, vector<1x4x32xf32>
    %2 = vector.shape_cast %1 : vector<1x4x32xf32> to vector<4x32xf32>
    %c1 = arith.constant 1 : index
    %c0_2 = arith.constant 0 : index
    %c0_3 = arith.constant 0 : index
    %3 = vector.load %arg1[%c1, %c0_2, %c0_3] : memref<3x4x32xf32, #tpu.memory_space<vmem>>, vector<1x4x32xf32>
    %4 = vector.shape_cast %3 : vector<1x4x32xf32> to vector<4x32xf32>
    %c2 = arith.constant 2 : index
    %c0_4 = arith.constant 0 : index
    %c0_5 = arith.constant 0 : index
    %5 = vector.load %arg1[%c2, %c0_4, %c0_5] : memref<3x4x32xf32, #tpu.memory_space<vmem>>, vector<1x4x32xf32>
    %6 = vector.shape_cast %5 : vector<1x4x32xf32> to vector<4x32xf32>
    %7 = tpu.concatenate %2, %4, %6, %0 in 1 : vector<4x32xf32>, vector<4x32xf32>, vector<4x32xf32>, vector<4x32xf32> -> vector<4x128xf32>
    %c0_6 = arith.constant 0 : index
    %c0_7 = arith.constant 0 : index
    %c0_8 = arith.constant 0 : index
    %8 = vector.load %arg2[%c0_6, %c0_7, %c0_8] : memref<3x4x32xf32, #tpu.memory_space<vmem>>, vector<1x4x32xf32>
    %9 = vector.shape_cast %8 : vector<1x4x32xf32> to vector<4x32xf32>
    %c1_9 = arith.constant 1 : index
    %c0_10 = arith.constant 0 : index
    %c0_11 = arith.constant 0 : index
    %10 = vector.load %arg2[%c1_9, %c0_10, %c0_11] : memref<3x4x32xf32, #tpu.memory_space<vmem>>, vector<1x4x32xf32>
    %11 = vector.shape_cast %10 : vector<1x4x32xf32> to vector<4x32xf32>
    %c2_12 = arith.constant 2 : index
    %c0_13 = arith.constant 0 : index
    %c0_14 = arith.constant 0 : index
    %12 = vector.load %arg2[%c2_12, %c0_13, %c0_14] : memref<3x4x32xf32, #tpu.memory_space<vmem>>, vector<1x4x32xf32>
    %13 = vector.shape_cast %12 : vector<1x4x32xf32> to vector<4x32xf32>
    %14 = tpu.concatenate %9, %11, %13, %0 in 1 : vector<4x32xf32>, vector<4x32xf32>, vector<4x32xf32>, vector<4x32xf32> -> vector<4x128xf32>
    %c0_15 = arith.constant 0 : index
    %c0_16 = arith.constant 0 : index
    %15 = vector.load %arg4[%c0_15, %c0_16] : memref<1x512xf32, #tpu.memory_space<vmem>>, vector<1x512xf32>
    %c0_17 = arith.constant 0 : index
    %c0_18 = arith.constant 0 : index
    %16 = vector.load %arg5[%c0_17, %c0_18] : memref<1x512xf32, #tpu.memory_space<vmem>>, vector<1x512xf32>
    %c0_19 = arith.constant 0 : index
    %c0_20 = arith.constant 0 : index
    %c0_21 = arith.constant 0 : index
    %17 = vector.load %arg0[%c0_19, %c0_20, %c0_21] : memref<8x4x1xf32, #tpu.memory_space<vmem>>, vector<1x4x1xf32>
    %18 = vector.shape_cast %17 : vector<1x4x1xf32> to vector<4x1xf32>
    %19 = vector.broadcast %18 : vector<4x1xf32> to vector<4x512xf32>
    %20 = vector.broadcast %16 : vector<1x512xf32> to vector<4x512xf32>
    %21 = arith.mulf %19, %20 : vector<4x512xf32>
    %22 = vector.broadcast %15 : vector<1x512xf32> to vector<4x512xf32>
    %23 = arith.addf %22, %21 : vector<4x512xf32>
    %c0_22 = arith.constant 0 : index
    %c0_23 = arith.constant 0 : index
    %24 = vector.load %arg3[%c0_22, %c0_23] : memref<128x512xf32, #tpu.memory_space<vmem>>, vector<128x512xf32>
    %cst_24 = arith.constant dense<0.000000e+00> : vector<4x512xf32>
    %25 = tpu.matmul %7, %24, %cst_24 {dimension_numbers = #tpu.dot_dimension_numbers<[1], [0], [0], [1], [0, 0, 1, 1], [], []>} : vector<4x128xf32>, vector<128x512xf32>, vector<4x512xf32> -> vector<4x512xf32>
    %26 = arith.addf %25, %23 : vector<4x512xf32>
    %27 = math.tanh %26 : vector<4x512xf32>
    %28 = vector.extract_strided_slice %27 {offsets = [0, 0], sizes = [4, 128], strides = [1, 1]} : vector<4x512xf32> to vector<4x128xf32>
    %cst_25 = arith.constant 5.000000e-01 : f32
    %29 = vector.broadcast %cst_25 : f32 to vector<4x128xf32>
    %30 = arith.mulf %28, %29 : vector<4x128xf32>
    %cst_26 = arith.constant 5.000000e-01 : f32
    %31 = vector.broadcast %cst_26 : f32 to vector<4x128xf32>
    %32 = arith.addf %30, %31 : vector<4x128xf32>
    %33 = vector.extract_strided_slice %27 {offsets = [0, 128], sizes = [4, 128], strides = [1, 1]} : vector<4x512xf32> to vector<4x128xf32>
    %cst_27 = arith.constant 5.000000e-01 : f32
    %34 = vector.broadcast %cst_27 : f32 to vector<4x128xf32>
    %35 = arith.mulf %33, %34 : vector<4x128xf32>
    %cst_28 = arith.constant 5.000000e-01 : f32
    %36 = vector.broadcast %cst_28 : f32 to vector<4x128xf32>
    %37 = arith.addf %35, %36 : vector<4x128xf32>
    %38 = vector.extract_strided_slice %27 {offsets = [0, 256], sizes = [4, 128], strides = [1, 1]} : vector<4x512xf32> to vector<4x128xf32>
    %39 = vector.extract_strided_slice %27 {offsets = [0, 384], sizes = [4, 128], strides = [1, 1]} : vector<4x512xf32> to vector<4x128xf32>
    %cst_29 = arith.constant 5.000000e-01 : f32
    %40 = vector.broadcast %cst_29 : f32 to vector<4x128xf32>
    %41 = arith.mulf %39, %40 : vector<4x128xf32>
    %cst_30 = arith.constant 5.000000e-01 : f32
    %42 = vector.broadcast %cst_30 : f32 to vector<4x128xf32>
    %43 = arith.addf %41, %42 : vector<4x128xf32>
    %44 = arith.mulf %37, %14 : vector<4x128xf32>
    %45 = arith.mulf %32, %38 : vector<4x128xf32>
    %46 = arith.addf %44, %45 : vector<4x128xf32>
    %47 = math.tanh %46 : vector<4x128xf32>
    %48 = arith.mulf %43, %47 : vector<4x128xf32>
    %49 = tpu.iota {dimensions = array<i32: 1>} : vector<4x128xi32>
    %c0_i32 = arith.constant 0 : i32
    %50 = vector.broadcast %c0_i32 : i32 to vector<4x128xi32>
    %51 = arith.cmpi sge, %49, %50 : vector<4x128xi32>
    %c32_i32 = arith.constant 32 : i32
    %52 = vector.broadcast %c32_i32 : i32 to vector<4x128xi32>
    %53 = arith.cmpi slt, %49, %52 : vector<4x128xi32>
    %54 = arith.andi %51, %53 : vector<4x128xi1>
    %55 = arith.select %54, %48, %7 : vector<4x128xi1>, vector<4x128xf32>
    %56 = arith.select %54, %46, %14 : vector<4x128xi1>, vector<4x128xf32>
    %c1_31 = arith.constant 1 : index
    %c0_32 = arith.constant 0 : index
    %c0_33 = arith.constant 0 : index
    %57 = vector.load %arg0[%c1_31, %c0_32, %c0_33] : memref<8x4x1xf32, #tpu.memory_space<vmem>>, vector<1x4x1xf32>
    %58 = vector.shape_cast %57 : vector<1x4x1xf32> to vector<4x1xf32>
    %59 = vector.broadcast %58 : vector<4x1xf32> to vector<4x512xf32>
    %60 = vector.broadcast %16 : vector<1x512xf32> to vector<4x512xf32>
    %61 = arith.mulf %59, %60 : vector<4x512xf32>
    %62 = vector.broadcast %15 : vector<1x512xf32> to vector<4x512xf32>
    %63 = arith.addf %62, %61 : vector<4x512xf32>
    %c0_34 = arith.constant 0 : index
    %c0_35 = arith.constant 0 : index
    %64 = vector.load %arg3[%c0_34, %c0_35] : memref<128x512xf32, #tpu.memory_space<vmem>>, vector<128x512xf32>
    %cst_36 = arith.constant dense<0.000000e+00> : vector<4x512xf32>
    %65 = tpu.matmul %55, %64, %cst_36 {dimension_numbers = #tpu.dot_dimension_numbers<[1], [0], [0], [1], [0, 0, 1, 1], [], []>} : vector<4x128xf32>, vector<128x512xf32>, vector<4x512xf32> -> vector<4x512xf32>
    %66 = arith.addf %65, %63 : vector<4x512xf32>
    %67 = math.tanh %66 : vector<4x512xf32>
    %68 = vector.extract_strided_slice %67 {offsets = [0, 0], sizes = [4, 128], strides = [1, 1]} : vector<4x512xf32> to vector<4x128xf32>
    %cst_37 = arith.constant 5.000000e-01 : f32
    %69 = vector.broadcast %cst_37 : f32 to vector<4x128xf32>
    %70 = arith.mulf %68, %69 : vector<4x128xf32>
    %cst_38 = arith.constant 5.000000e-01 : f32
    %71 = vector.broadcast %cst_38 : f32 to vector<4x128xf32>
    %72 = arith.addf %70, %71 : vector<4x128xf32>
    %73 = vector.extract_strided_slice %67 {offsets = [0, 128], sizes = [4, 128], strides = [1, 1]} : vector<4x512xf32> to vector<4x128xf32>
    %cst_39 = arith.constant 5.000000e-01 : f32
    %74 = vector.broadcast %cst_39 : f32 to vector<4x128xf32>
    %75 = arith.mulf %73, %74 : vector<4x128xf32>
    %cst_40 = arith.constant 5.000000e-01 : f32
    %76 = vector.broadcast %cst_40 : f32 to vector<4x128xf32>
    %77 = arith.addf %75, %76 : vector<4x128xf32>
    %78 = vector.extract_strided_slice %67 {offsets = [0, 256], sizes = [4, 128], strides = [1, 1]} : vector<4x512xf32> to vector<4x128xf32>
    %79 = vector.extract_strided_slice %67 {offsets = [0, 384], sizes = [4, 128], strides = [1, 1]} : vector<4x512xf32> to vector<4x128xf32>
    %cst_41 = arith.constant 5.000000e-01 : f32
    %80 = vector.broadcast %cst_41 : f32 to vector<4x128xf32>
    %81 = arith.mulf %79, %80 : vector<4x128xf32>
    %cst_42 = arith.constant 5.000000e-01 : f32
    %82 = vector.broadcast %cst_42 : f32 to vector<4x128xf32>
    %83 = arith.addf %81, %82 : vector<4x128xf32>
    %84 = arith.mulf %77, %56 : vector<4x128xf32>
    %85 = arith.mulf %72, %78 : vector<4x128xf32>
    %86 = arith.addf %84, %85 : vector<4x128xf32>
    %87 = math.tanh %86 : vector<4x128xf32>
    %88 = arith.mulf %83, %87 : vector<4x128xf32>
    %89 = tpu.iota {dimensions = array<i32: 1>} : vector<4x128xi32>
    %c0_i32_43 = arith.constant 0 : i32
    %90 = vector.broadcast %c0_i32_43 : i32 to vector<4x128xi32>
    %91 = arith.cmpi sge, %89, %90 : vector<4x128xi32>
    %c64_i32 = arith.constant 64 : i32
    %92 = vector.broadcast %c64_i32 : i32 to vector<4x128xi32>
    %93 = arith.cmpi slt, %89, %92 : vector<4x128xi32>
    %94 = arith.andi %91, %93 : vector<4x128xi1>
    %95 = arith.select %94, %88, %55 : vector<4x128xi1>, vector<4x128xf32>
    %96 = arith.select %94, %86, %56 : vector<4x128xi1>, vector<4x128xf32>
    %c2_44 = arith.constant 2 : index
    %c0_45 = arith.constant 0 : index
    %c0_46 = arith.constant 0 : index
    %97 = vector.load %arg0[%c2_44, %c0_45, %c0_46] : memref<8x4x1xf32, #tpu.memory_space<vmem>>, vector<1x4x1xf32>
    %98 = vector.shape_cast %97 : vector<1x4x1xf32> to vector<4x1xf32>
    %99 = vector.broadcast %98 : vector<4x1xf32> to vector<4x512xf32>
    %100 = vector.broadcast %16 : vector<1x512xf32> to vector<4x512xf32>
    %101 = arith.mulf %99, %100 : vector<4x512xf32>
    %102 = vector.broadcast %15 : vector<1x512xf32> to vector<4x512xf32>
    %103 = arith.addf %102, %101 : vector<4x512xf32>
    %c0_47 = arith.constant 0 : index
    %c0_48 = arith.constant 0 : index
    %104 = vector.load %arg3[%c0_47, %c0_48] : memref<128x512xf32, #tpu.memory_space<vmem>>, vector<128x512xf32>
    %cst_49 = arith.constant dense<0.000000e+00> : vector<4x512xf32>
    %105 = tpu.matmul %95, %104, %cst_49 {dimension_numbers = #tpu.dot_dimension_numbers<[1], [0], [0], [1], [0, 0, 1, 1], [], []>} : vector<4x128xf32>, vector<128x512xf32>, vector<4x512xf32> -> vector<4x512xf32>
    %106 = arith.addf %105, %103 : vector<4x512xf32>
    %107 = math.tanh %106 : vector<4x512xf32>
    %108 = vector.extract_strided_slice %107 {offsets = [0, 0], sizes = [4, 128], strides = [1, 1]} : vector<4x512xf32> to vector<4x128xf32>
    %cst_50 = arith.constant 5.000000e-01 : f32
    %109 = vector.broadcast %cst_50 : f32 to vector<4x128xf32>
    %110 = arith.mulf %108, %109 : vector<4x128xf32>
    %cst_51 = arith.constant 5.000000e-01 : f32
    %111 = vector.broadcast %cst_51 : f32 to vector<4x128xf32>
    %112 = arith.addf %110, %111 : vector<4x128xf32>
    %113 = vector.extract_strided_slice %107 {offsets = [0, 128], sizes = [4, 128], strides = [1, 1]} : vector<4x512xf32> to vector<4x128xf32>
    %cst_52 = arith.constant 5.000000e-01 : f32
    %114 = vector.broadcast %cst_52 : f32 to vector<4x128xf32>
    %115 = arith.mulf %113, %114 : vector<4x128xf32>
    %cst_53 = arith.constant 5.000000e-01 : f32
    %116 = vector.broadcast %cst_53 : f32 to vector<4x128xf32>
    %117 = arith.addf %115, %116 : vector<4x128xf32>
    %118 = vector.extract_strided_slice %107 {offsets = [0, 256], sizes = [4, 128], strides = [1, 1]} : vector<4x512xf32> to vector<4x128xf32>
    %119 = vector.extract_strided_slice %107 {offsets = [0, 384], sizes = [4, 128], strides = [1, 1]} : vector<4x512xf32> to vector<4x128xf32>
    %cst_54 = arith.constant 5.000000e-01 : f32
    %120 = vector.broadcast %cst_54 : f32 to vector<4x128xf32>
    %121 = arith.mulf %119, %120 : vector<4x128xf32>
    %cst_55 = arith.constant 5.000000e-01 : f32
    %122 = vector.broadcast %cst_55 : f32 to vector<4x128xf32>
    %123 = arith.addf %121, %122 : vector<4x128xf32>
    %124 = arith.mulf %117, %96 : vector<4x128xf32>
    %125 = arith.mulf %112, %118 : vector<4x128xf32>
    %126 = arith.addf %124, %125 : vector<4x128xf32>
    %127 = math.tanh %126 : vector<4x128xf32>
    %128 = arith.mulf %123, %127 : vector<4x128xf32>
    %c3 = arith.constant 3 : index
    %c0_56 = arith.constant 0 : index
    %c0_57 = arith.constant 0 : index
    %129 = vector.load %arg0[%c3, %c0_56, %c0_57] : memref<8x4x1xf32, #tpu.memory_space<vmem>>, vector<1x4x1xf32>
    %130 = vector.shape_cast %129 : vector<1x4x1xf32> to vector<4x1xf32>
    %131 = vector.broadcast %130 : vector<4x1xf32> to vector<4x512xf32>
    %132 = vector.broadcast %16 : vector<1x512xf32> to vector<4x512xf32>
    %133 = arith.mulf %131, %132 : vector<4x512xf32>
    %134 = vector.broadcast %15 : vector<1x512xf32> to vector<4x512xf32>
    %135 = arith.addf %134, %133 : vector<4x512xf32>
    %c0_58 = arith.constant 0 : index
    %c0_59 = arith.constant 0 : index
    %136 = vector.load %arg3[%c0_58, %c0_59] : memref<128x512xf32, #tpu.memory_space<vmem>>, vector<128x512xf32>
    %cst_60 = arith.constant dense<0.000000e+00> : vector<4x512xf32>
    %137 = tpu.matmul %128, %136, %cst_60 {dimension_numbers = #tpu.dot_dimension_numbers<[1], [0], [0], [1], [0, 0, 1, 1], [], []>} : vector<4x128xf32>, vector<128x512xf32>, vector<4x512xf32> -> vector<4x512xf32>
    %138 = arith.addf %137, %135 : vector<4x512xf32>
    %139 = math.tanh %138 : vector<4x512xf32>
    %140 = vector.extract_strided_slice %139 {offsets = [0, 0], sizes = [4, 128], strides = [1, 1]} : vector<4x512xf32> to vector<4x128xf32>
    %cst_61 = arith.constant 5.000000e-01 : f32
    %141 = vector.broadcast %cst_61 : f32 to vector<4x128xf32>
    %142 = arith.mulf %140, %141 : vector<4x128xf32>
    %cst_62 = arith.constant 5.000000e-01 : f32
    %143 = vector.broadcast %cst_62 : f32 to vector<4x128xf32>
    %144 = arith.addf %142, %143 : vector<4x128xf32>
    %145 = vector.extract_strided_slice %139 {offsets = [0, 128], sizes = [4, 128], strides = [1, 1]} : vector<4x512xf32> to vector<4x128xf32>
    %cst_63 = arith.constant 5.000000e-01 : f32
    %146 = vector.broadcast %cst_63 : f32 to vector<4x128xf32>
    %147 = arith.mulf %145, %146 : vector<4x128xf32>
    %cst_64 = arith.constant 5.000000e-01 : f32
    %148 = vector.broadcast %cst_64 : f32 to vector<4x128xf32>
    %149 = arith.addf %147, %148 : vector<4x128xf32>
    %150 = vector.extract_strided_slice %139 {offsets = [0, 256], sizes = [4, 128], strides = [1, 1]} : vector<4x512xf32> to vector<4x128xf32>
    %151 = vector.extract_strided_slice %139 {offsets = [0, 384], sizes = [4, 128], strides = [1, 1]} : vector<4x512xf32> to vector<4x128xf32>
    %cst_65 = arith.constant 5.000000e-01 : f32
    %152 = vector.broadcast %cst_65 : f32 to vector<4x128xf32>
    %153 = arith.mulf %151, %152 : vector<4x128xf32>
    %cst_66 = arith.constant 5.000000e-01 : f32
    %154 = vector.broadcast %cst_66 : f32 to vector<4x128xf32>
    %155 = arith.addf %153, %154 : vector<4x128xf32>
    %156 = arith.mulf %149, %126 : vector<4x128xf32>
    %157 = arith.mulf %144, %150 : vector<4x128xf32>
    %158 = arith.addf %156, %157 : vector<4x128xf32>
    %159 = math.tanh %158 : vector<4x128xf32>
    %160 = arith.mulf %155, %159 : vector<4x128xf32>
    %c4 = arith.constant 4 : index
    %c0_67 = arith.constant 0 : index
    %c0_68 = arith.constant 0 : index
    %161 = vector.load %arg0[%c4, %c0_67, %c0_68] : memref<8x4x1xf32, #tpu.memory_space<vmem>>, vector<1x4x1xf32>
    %162 = vector.shape_cast %161 : vector<1x4x1xf32> to vector<4x1xf32>
    %163 = vector.broadcast %162 : vector<4x1xf32> to vector<4x512xf32>
    %164 = vector.broadcast %16 : vector<1x512xf32> to vector<4x512xf32>
    %165 = arith.mulf %163, %164 : vector<4x512xf32>
    %166 = vector.broadcast %15 : vector<1x512xf32> to vector<4x512xf32>
    %167 = arith.addf %166, %165 : vector<4x512xf32>
    %c0_69 = arith.constant 0 : index
    %c0_70 = arith.constant 0 : index
    %168 = vector.load %arg3[%c0_69, %c0_70] : memref<128x512xf32, #tpu.memory_space<vmem>>, vector<128x512xf32>
    %cst_71 = arith.constant dense<0.000000e+00> : vector<4x512xf32>
    %169 = tpu.matmul %160, %168, %cst_71 {dimension_numbers = #tpu.dot_dimension_numbers<[1], [0], [0], [1], [0, 0, 1, 1], [], []>} : vector<4x128xf32>, vector<128x512xf32>, vector<4x512xf32> -> vector<4x512xf32>
    %170 = arith.addf %169, %167 : vector<4x512xf32>
    %171 = math.tanh %170 : vector<4x512xf32>
    %172 = vector.extract_strided_slice %171 {offsets = [0, 0], sizes = [4, 128], strides = [1, 1]} : vector<4x512xf32> to vector<4x128xf32>
    %cst_72 = arith.constant 5.000000e-01 : f32
    %173 = vector.broadcast %cst_72 : f32 to vector<4x128xf32>
    %174 = arith.mulf %172, %173 : vector<4x128xf32>
    %cst_73 = arith.constant 5.000000e-01 : f32
    %175 = vector.broadcast %cst_73 : f32 to vector<4x128xf32>
    %176 = arith.addf %174, %175 : vector<4x128xf32>
    %177 = vector.extract_strided_slice %171 {offsets = [0, 128], sizes = [4, 128], strides = [1, 1]} : vector<4x512xf32> to vector<4x128xf32>
    %cst_74 = arith.constant 5.000000e-01 : f32
    %178 = vector.broadcast %cst_74 : f32 to vector<4x128xf32>
    %179 = arith.mulf %177, %178 : vector<4x128xf32>
    %cst_75 = arith.constant 5.000000e-01 : f32
    %180 = vector.broadcast %cst_75 : f32 to vector<4x128xf32>
    %181 = arith.addf %179, %180 : vector<4x128xf32>
    %182 = vector.extract_strided_slice %171 {offsets = [0, 256], sizes = [4, 128], strides = [1, 1]} : vector<4x512xf32> to vector<4x128xf32>
    %183 = vector.extract_strided_slice %171 {offsets = [0, 384], sizes = [4, 128], strides = [1, 1]} : vector<4x512xf32> to vector<4x128xf32>
    %cst_76 = arith.constant 5.000000e-01 : f32
    %184 = vector.broadcast %cst_76 : f32 to vector<4x128xf32>
    %185 = arith.mulf %183, %184 : vector<4x128xf32>
    %cst_77 = arith.constant 5.000000e-01 : f32
    %186 = vector.broadcast %cst_77 : f32 to vector<4x128xf32>
    %187 = arith.addf %185, %186 : vector<4x128xf32>
    %188 = arith.mulf %181, %158 : vector<4x128xf32>
    %189 = arith.mulf %176, %182 : vector<4x128xf32>
    %190 = arith.addf %188, %189 : vector<4x128xf32>
    %191 = math.tanh %190 : vector<4x128xf32>
    %192 = arith.mulf %187, %191 : vector<4x128xf32>
    %c5 = arith.constant 5 : index
    %c0_78 = arith.constant 0 : index
    %c0_79 = arith.constant 0 : index
    %193 = vector.load %arg0[%c5, %c0_78, %c0_79] : memref<8x4x1xf32, #tpu.memory_space<vmem>>, vector<1x4x1xf32>
    %194 = vector.shape_cast %193 : vector<1x4x1xf32> to vector<4x1xf32>
    %195 = vector.broadcast %194 : vector<4x1xf32> to vector<4x512xf32>
    %196 = vector.broadcast %16 : vector<1x512xf32> to vector<4x512xf32>
    %197 = arith.mulf %195, %196 : vector<4x512xf32>
    %198 = vector.broadcast %15 : vector<1x512xf32> to vector<4x512xf32>
    %199 = arith.addf %198, %197 : vector<4x512xf32>
    %c0_80 = arith.constant 0 : index
    %c0_81 = arith.constant 0 : index
    %200 = vector.load %arg3[%c0_80, %c0_81] : memref<128x512xf32, #tpu.memory_space<vmem>>, vector<128x512xf32>
    %cst_82 = arith.constant dense<0.000000e+00> : vector<4x512xf32>
    %201 = tpu.matmul %192, %200, %cst_82 {dimension_numbers = #tpu.dot_dimension_numbers<[1], [0], [0], [1], [0, 0, 1, 1], [], []>} : vector<4x128xf32>, vector<128x512xf32>, vector<4x512xf32> -> vector<4x512xf32>
    %202 = arith.addf %201, %199 : vector<4x512xf32>
    %203 = math.tanh %202 : vector<4x512xf32>
    %204 = vector.extract_strided_slice %203 {offsets = [0, 0], sizes = [4, 128], strides = [1, 1]} : vector<4x512xf32> to vector<4x128xf32>
    %cst_83 = arith.constant 5.000000e-01 : f32
    %205 = vector.broadcast %cst_83 : f32 to vector<4x128xf32>
    %206 = arith.mulf %204, %205 : vector<4x128xf32>
    %cst_84 = arith.constant 5.000000e-01 : f32
    %207 = vector.broadcast %cst_84 : f32 to vector<4x128xf32>
    %208 = arith.addf %206, %207 : vector<4x128xf32>
    %209 = vector.extract_strided_slice %203 {offsets = [0, 128], sizes = [4, 128], strides = [1, 1]} : vector<4x512xf32> to vector<4x128xf32>
    %cst_85 = arith.constant 5.000000e-01 : f32
    %210 = vector.broadcast %cst_85 : f32 to vector<4x128xf32>
    %211 = arith.mulf %209, %210 : vector<4x128xf32>
    %cst_86 = arith.constant 5.000000e-01 : f32
    %212 = vector.broadcast %cst_86 : f32 to vector<4x128xf32>
    %213 = arith.addf %211, %212 : vector<4x128xf32>
    %214 = vector.extract_strided_slice %203 {offsets = [0, 256], sizes = [4, 128], strides = [1, 1]} : vector<4x512xf32> to vector<4x128xf32>
    %215 = vector.extract_strided_slice %203 {offsets = [0, 384], sizes = [4, 128], strides = [1, 1]} : vector<4x512xf32> to vector<4x128xf32>
    %cst_87 = arith.constant 5.000000e-01 : f32
    %216 = vector.broadcast %cst_87 : f32 to vector<4x128xf32>
    %217 = arith.mulf %215, %216 : vector<4x128xf32>
    %cst_88 = arith.constant 5.000000e-01 : f32
    %218 = vector.broadcast %cst_88 : f32 to vector<4x128xf32>
    %219 = arith.addf %217, %218 : vector<4x128xf32>
    %220 = arith.mulf %213, %190 : vector<4x128xf32>
    %221 = arith.mulf %208, %214 : vector<4x128xf32>
    %222 = arith.addf %220, %221 : vector<4x128xf32>
    %223 = math.tanh %222 : vector<4x128xf32>
    %224 = arith.mulf %219, %223 : vector<4x128xf32>
    %c6 = arith.constant 6 : index
    %c0_89 = arith.constant 0 : index
    %c0_90 = arith.constant 0 : index
    %225 = vector.load %arg0[%c6, %c0_89, %c0_90] : memref<8x4x1xf32, #tpu.memory_space<vmem>>, vector<1x4x1xf32>
    %226 = vector.shape_cast %225 : vector<1x4x1xf32> to vector<4x1xf32>
    %227 = vector.broadcast %226 : vector<4x1xf32> to vector<4x512xf32>
    %228 = vector.broadcast %16 : vector<1x512xf32> to vector<4x512xf32>
    %229 = arith.mulf %227, %228 : vector<4x512xf32>
    %230 = vector.broadcast %15 : vector<1x512xf32> to vector<4x512xf32>
    %231 = arith.addf %230, %229 : vector<4x512xf32>
    %c0_91 = arith.constant 0 : index
    %c0_92 = arith.constant 0 : index
    %232 = vector.load %arg3[%c0_91, %c0_92] : memref<128x512xf32, #tpu.memory_space<vmem>>, vector<128x512xf32>
    %cst_93 = arith.constant dense<0.000000e+00> : vector<4x512xf32>
    %233 = tpu.matmul %224, %232, %cst_93 {dimension_numbers = #tpu.dot_dimension_numbers<[1], [0], [0], [1], [0, 0, 1, 1], [], []>} : vector<4x128xf32>, vector<128x512xf32>, vector<4x512xf32> -> vector<4x512xf32>
    %234 = arith.addf %233, %231 : vector<4x512xf32>
    %235 = math.tanh %234 : vector<4x512xf32>
    %236 = vector.extract_strided_slice %235 {offsets = [0, 0], sizes = [4, 128], strides = [1, 1]} : vector<4x512xf32> to vector<4x128xf32>
    %cst_94 = arith.constant 5.000000e-01 : f32
    %237 = vector.broadcast %cst_94 : f32 to vector<4x128xf32>
    %238 = arith.mulf %236, %237 : vector<4x128xf32>
    %cst_95 = arith.constant 5.000000e-01 : f32
    %239 = vector.broadcast %cst_95 : f32 to vector<4x128xf32>
    %240 = arith.addf %238, %239 : vector<4x128xf32>
    %241 = vector.extract_strided_slice %235 {offsets = [0, 128], sizes = [4, 128], strides = [1, 1]} : vector<4x512xf32> to vector<4x128xf32>
    %cst_96 = arith.constant 5.000000e-01 : f32
    %242 = vector.broadcast %cst_96 : f32 to vector<4x128xf32>
    %243 = arith.mulf %241, %242 : vector<4x128xf32>
    %cst_97 = arith.constant 5.000000e-01 : f32
    %244 = vector.broadcast %cst_97 : f32 to vector<4x128xf32>
    %245 = arith.addf %243, %244 : vector<4x128xf32>
    %246 = vector.extract_strided_slice %235 {offsets = [0, 256], sizes = [4, 128], strides = [1, 1]} : vector<4x512xf32> to vector<4x128xf32>
    %247 = vector.extract_strided_slice %235 {offsets = [0, 384], sizes = [4, 128], strides = [1, 1]} : vector<4x512xf32> to vector<4x128xf32>
    %cst_98 = arith.constant 5.000000e-01 : f32
    %248 = vector.broadcast %cst_98 : f32 to vector<4x128xf32>
    %249 = arith.mulf %247, %248 : vector<4x128xf32>
    %cst_99 = arith.constant 5.000000e-01 : f32
    %250 = vector.broadcast %cst_99 : f32 to vector<4x128xf32>
    %251 = arith.addf %249, %250 : vector<4x128xf32>
    %252 = arith.mulf %245, %222 : vector<4x128xf32>
    %253 = arith.mulf %240, %246 : vector<4x128xf32>
    %254 = arith.addf %252, %253 : vector<4x128xf32>
    %255 = math.tanh %254 : vector<4x128xf32>
    %256 = arith.mulf %251, %255 : vector<4x128xf32>
    %c7 = arith.constant 7 : index
    %c0_100 = arith.constant 0 : index
    %c0_101 = arith.constant 0 : index
    %257 = vector.load %arg0[%c7, %c0_100, %c0_101] : memref<8x4x1xf32, #tpu.memory_space<vmem>>, vector<1x4x1xf32>
    %258 = vector.shape_cast %257 : vector<1x4x1xf32> to vector<4x1xf32>
    %259 = vector.broadcast %258 : vector<4x1xf32> to vector<4x512xf32>
    %260 = vector.broadcast %16 : vector<1x512xf32> to vector<4x512xf32>
    %261 = arith.mulf %259, %260 : vector<4x512xf32>
    %262 = vector.broadcast %15 : vector<1x512xf32> to vector<4x512xf32>
    %263 = arith.addf %262, %261 : vector<4x512xf32>
    %c0_102 = arith.constant 0 : index
    %c0_103 = arith.constant 0 : index
    %264 = vector.load %arg3[%c0_102, %c0_103] : memref<128x512xf32, #tpu.memory_space<vmem>>, vector<128x512xf32>
    %cst_104 = arith.constant dense<0.000000e+00> : vector<4x512xf32>
    %265 = tpu.matmul %256, %264, %cst_104 {dimension_numbers = #tpu.dot_dimension_numbers<[1], [0], [0], [1], [0, 0, 1, 1], [], []>} : vector<4x128xf32>, vector<128x512xf32>, vector<4x512xf32> -> vector<4x512xf32>
    %266 = arith.addf %265, %263 : vector<4x512xf32>
    %267 = math.tanh %266 : vector<4x512xf32>
    %268 = vector.extract_strided_slice %267 {offsets = [0, 0], sizes = [4, 128], strides = [1, 1]} : vector<4x512xf32> to vector<4x128xf32>
    %cst_105 = arith.constant 5.000000e-01 : f32
    %269 = vector.broadcast %cst_105 : f32 to vector<4x128xf32>
    %270 = arith.mulf %268, %269 : vector<4x128xf32>
    %cst_106 = arith.constant 5.000000e-01 : f32
    %271 = vector.broadcast %cst_106 : f32 to vector<4x128xf32>
    %272 = arith.addf %270, %271 : vector<4x128xf32>
    %273 = vector.extract_strided_slice %267 {offsets = [0, 128], sizes = [4, 128], strides = [1, 1]} : vector<4x512xf32> to vector<4x128xf32>
    %cst_107 = arith.constant 5.000000e-01 : f32
    %274 = vector.broadcast %cst_107 : f32 to vector<4x128xf32>
    %275 = arith.mulf %273, %274 : vector<4x128xf32>
    %cst_108 = arith.constant 5.000000e-01 : f32
    %276 = vector.broadcast %cst_108 : f32 to vector<4x128xf32>
    %277 = arith.addf %275, %276 : vector<4x128xf32>
    %278 = vector.extract_strided_slice %267 {offsets = [0, 256], sizes = [4, 128], strides = [1, 1]} : vector<4x512xf32> to vector<4x128xf32>
    %279 = vector.extract_strided_slice %267 {offsets = [0, 384], sizes = [4, 128], strides = [1, 1]} : vector<4x512xf32> to vector<4x128xf32>
    %cst_109 = arith.constant 5.000000e-01 : f32
    %280 = vector.broadcast %cst_109 : f32 to vector<4x128xf32>
    %281 = arith.mulf %279, %280 : vector<4x128xf32>
    %cst_110 = arith.constant 5.000000e-01 : f32
    %282 = vector.broadcast %cst_110 : f32 to vector<4x128xf32>
    %283 = arith.addf %281, %282 : vector<4x128xf32>
    %284 = arith.mulf %277, %254 : vector<4x128xf32>
    %285 = arith.mulf %272, %278 : vector<4x128xf32>
    %286 = arith.addf %284, %285 : vector<4x128xf32>
    %287 = math.tanh %286 : vector<4x128xf32>
    %288 = arith.mulf %283, %287 : vector<4x128xf32>
    %c0_111 = arith.constant 0 : index
    %c0_112 = arith.constant 0 : index
    %289 = vector.load %arg3[%c0_111, %c0_112] : memref<128x512xf32, #tpu.memory_space<vmem>>, vector<128x512xf32>
    %cst_113 = arith.constant dense<0.000000e+00> : vector<4x512xf32>
    %290 = tpu.matmul %288, %289, %cst_113 {dimension_numbers = #tpu.dot_dimension_numbers<[1], [0], [0], [1], [0, 0, 1, 1], [], []>} : vector<4x128xf32>, vector<128x512xf32>, vector<4x512xf32> -> vector<4x512xf32>
    %291 = vector.broadcast %15 : vector<1x512xf32> to vector<4x512xf32>
    %292 = arith.addf %290, %291 : vector<4x512xf32>
    %293 = math.tanh %292 : vector<4x512xf32>
    %294 = vector.extract_strided_slice %293 {offsets = [0, 0], sizes = [4, 128], strides = [1, 1]} : vector<4x512xf32> to vector<4x128xf32>
    %cst_114 = arith.constant 5.000000e-01 : f32
    %295 = vector.broadcast %cst_114 : f32 to vector<4x128xf32>
    %296 = arith.mulf %294, %295 : vector<4x128xf32>
    %cst_115 = arith.constant 5.000000e-01 : f32
    %297 = vector.broadcast %cst_115 : f32 to vector<4x128xf32>
    %298 = arith.addf %296, %297 : vector<4x128xf32>
    %299 = vector.extract_strided_slice %293 {offsets = [0, 128], sizes = [4, 128], strides = [1, 1]} : vector<4x512xf32> to vector<4x128xf32>
    %cst_116 = arith.constant 5.000000e-01 : f32
    %300 = vector.broadcast %cst_116 : f32 to vector<4x128xf32>
    %301 = arith.mulf %299, %300 : vector<4x128xf32>
    %cst_117 = arith.constant 5.000000e-01 : f32
    %302 = vector.broadcast %cst_117 : f32 to vector<4x128xf32>
    %303 = arith.addf %301, %302 : vector<4x128xf32>
    %304 = vector.extract_strided_slice %293 {offsets = [0, 256], sizes = [4, 128], strides = [1, 1]} : vector<4x512xf32> to vector<4x128xf32>
    %305 = vector.extract_strided_slice %293 {offsets = [0, 384], sizes = [4, 128], strides = [1, 1]} : vector<4x512xf32> to vector<4x128xf32>
    %cst_118 = arith.constant 5.000000e-01 : f32
    %306 = vector.broadcast %cst_118 : f32 to vector<4x128xf32>
    %307 = arith.mulf %305, %306 : vector<4x128xf32>
    %cst_119 = arith.constant 5.000000e-01 : f32
    %308 = vector.broadcast %cst_119 : f32 to vector<4x128xf32>
    %309 = arith.addf %307, %308 : vector<4x128xf32>
    %310 = arith.mulf %303, %286 : vector<4x128xf32>
    %311 = arith.mulf %298, %304 : vector<4x128xf32>
    %312 = arith.addf %310, %311 : vector<4x128xf32>
    %313 = math.tanh %312 : vector<4x128xf32>
    %314 = arith.mulf %309, %313 : vector<4x128xf32>
    %315 = tpu.iota {dimensions = array<i32: 1>} : vector<4x128xi32>
    %c32_i32_120 = arith.constant 32 : i32
    %316 = vector.broadcast %c32_i32_120 : i32 to vector<4x128xi32>
    %317 = arith.cmpi sge, %315, %316 : vector<4x128xi32>
    %c96_i32 = arith.constant 96 : i32
    %318 = vector.broadcast %c96_i32 : i32 to vector<4x128xi32>
    %319 = arith.cmpi slt, %315, %318 : vector<4x128xi32>
    %320 = arith.andi %317, %319 : vector<4x128xi1>
    %321 = arith.select %320, %314, %288 : vector<4x128xi1>, vector<4x128xf32>
    %322 = arith.select %320, %312, %286 : vector<4x128xi1>, vector<4x128xf32>
    %c0_121 = arith.constant 0 : index
    %c0_122 = arith.constant 0 : index
    %323 = vector.load %arg3[%c0_121, %c0_122] : memref<128x512xf32, #tpu.memory_space<vmem>>, vector<128x512xf32>
    %cst_123 = arith.constant dense<0.000000e+00> : vector<4x512xf32>
    %324 = tpu.matmul %321, %323, %cst_123 {dimension_numbers = #tpu.dot_dimension_numbers<[1], [0], [0], [1], [0, 0, 1, 1], [], []>} : vector<4x128xf32>, vector<128x512xf32>, vector<4x512xf32> -> vector<4x512xf32>
    %325 = vector.broadcast %15 : vector<1x512xf32> to vector<4x512xf32>
    %326 = arith.addf %324, %325 : vector<4x512xf32>
    %327 = math.tanh %326 : vector<4x512xf32>
    %328 = vector.extract_strided_slice %327 {offsets = [0, 0], sizes = [4, 128], strides = [1, 1]} : vector<4x512xf32> to vector<4x128xf32>
    %cst_124 = arith.constant 5.000000e-01 : f32
    %329 = vector.broadcast %cst_124 : f32 to vector<4x128xf32>
    %330 = arith.mulf %328, %329 : vector<4x128xf32>
    %cst_125 = arith.constant 5.000000e-01 : f32
    %331 = vector.broadcast %cst_125 : f32 to vector<4x128xf32>
    %332 = arith.addf %330, %331 : vector<4x128xf32>
    %333 = vector.extract_strided_slice %327 {offsets = [0, 128], sizes = [4, 128], strides = [1, 1]} : vector<4x512xf32> to vector<4x128xf32>
    %cst_126 = arith.constant 5.000000e-01 : f32
    %334 = vector.broadcast %cst_126 : f32 to vector<4x128xf32>
    %335 = arith.mulf %333, %334 : vector<4x128xf32>
    %cst_127 = arith.constant 5.000000e-01 : f32
    %336 = vector.broadcast %cst_127 : f32 to vector<4x128xf32>
    %337 = arith.addf %335, %336 : vector<4x128xf32>
    %338 = vector.extract_strided_slice %327 {offsets = [0, 256], sizes = [4, 128], strides = [1, 1]} : vector<4x512xf32> to vector<4x128xf32>
    %339 = vector.extract_strided_slice %327 {offsets = [0, 384], sizes = [4, 128], strides = [1, 1]} : vector<4x512xf32> to vector<4x128xf32>
    %cst_128 = arith.constant 5.000000e-01 : f32
    %340 = vector.broadcast %cst_128 : f32 to vector<4x128xf32>
    %341 = arith.mulf %339, %340 : vector<4x128xf32>
    %cst_129 = arith.constant 5.000000e-01 : f32
    %342 = vector.broadcast %cst_129 : f32 to vector<4x128xf32>
    %343 = arith.addf %341, %342 : vector<4x128xf32>
    %344 = arith.mulf %337, %322 : vector<4x128xf32>
    %345 = arith.mulf %332, %338 : vector<4x128xf32>
    %346 = arith.addf %344, %345 : vector<4x128xf32>
    %347 = math.tanh %346 : vector<4x128xf32>
    %348 = arith.mulf %343, %347 : vector<4x128xf32>
    %349 = tpu.iota {dimensions = array<i32: 1>} : vector<4x128xi32>
    %c64_i32_130 = arith.constant 64 : i32
    %350 = vector.broadcast %c64_i32_130 : i32 to vector<4x128xi32>
    %351 = arith.cmpi sge, %349, %350 : vector<4x128xi32>
    %c96_i32_131 = arith.constant 96 : i32
    %352 = vector.broadcast %c96_i32_131 : i32 to vector<4x128xi32>
    %353 = arith.cmpi slt, %349, %352 : vector<4x128xi32>
    %354 = arith.andi %351, %353 : vector<4x128xi1>
    %355 = arith.select %354, %348, %321 : vector<4x128xi1>, vector<4x128xf32>
    %356 = arith.select %354, %346, %322 : vector<4x128xi1>, vector<4x128xf32>
    %357 = vector.extract_strided_slice %355 {offsets = [0, 0], sizes = [4, 32], strides = [1, 1]} : vector<4x128xf32> to vector<4x32xf32>
    %c0_132 = arith.constant 0 : index
    %c0_133 = arith.constant 0 : index
    %c0_134 = arith.constant 0 : index
    %358 = vector.load %arg9[%c0_132, %c0_133, %c0_134] : memref<3x4x32xf32, #tpu.memory_space<vmem>>, vector<1x4x32xf32>
    %359 = vector.shape_cast %358 : vector<1x4x32xf32> to vector<4x32xf32>
    %360 = vector.shape_cast %357 : vector<4x32xf32> to vector<1x4x32xf32>
    tpu.vector_store %arg9[%c0_132, %c0_133, %c0_134], %360 {strides = array<i32>} : memref<3x4x32xf32, #tpu.memory_space<vmem>>, vector<1x4x32xf32>,
    %361 = vector.extract_strided_slice %356 {offsets = [0, 0], sizes = [4, 32], strides = [1, 1]} : vector<4x128xf32> to vector<4x32xf32>
    %c0_135 = arith.constant 0 : index
    %c0_136 = arith.constant 0 : index
    %c0_137 = arith.constant 0 : index
    %362 = vector.load %arg10[%c0_135, %c0_136, %c0_137] : memref<3x4x32xf32, #tpu.memory_space<vmem>>, vector<1x4x32xf32>
    %363 = vector.shape_cast %362 : vector<1x4x32xf32> to vector<4x32xf32>
    %364 = vector.shape_cast %361 : vector<4x32xf32> to vector<1x4x32xf32>
    tpu.vector_store %arg10[%c0_135, %c0_136, %c0_137], %364 {strides = array<i32>} : memref<3x4x32xf32, #tpu.memory_space<vmem>>, vector<1x4x32xf32>,
    %365 = vector.extract_strided_slice %355 {offsets = [0, 32], sizes = [4, 32], strides = [1, 1]} : vector<4x128xf32> to vector<4x32xf32>
    %c1_138 = arith.constant 1 : index
    %c0_139 = arith.constant 0 : index
    %c0_140 = arith.constant 0 : index
    %366 = vector.load %arg9[%c1_138, %c0_139, %c0_140] : memref<3x4x32xf32, #tpu.memory_space<vmem>>, vector<1x4x32xf32>
    %367 = vector.shape_cast %366 : vector<1x4x32xf32> to vector<4x32xf32>
    %368 = vector.shape_cast %365 : vector<4x32xf32> to vector<1x4x32xf32>
    tpu.vector_store %arg9[%c1_138, %c0_139, %c0_140], %368 {strides = array<i32>} : memref<3x4x32xf32, #tpu.memory_space<vmem>>, vector<1x4x32xf32>,
    %369 = vector.extract_strided_slice %356 {offsets = [0, 32], sizes = [4, 32], strides = [1, 1]} : vector<4x128xf32> to vector<4x32xf32>
    %c1_141 = arith.constant 1 : index
    %c0_142 = arith.constant 0 : index
    %c0_143 = arith.constant 0 : index
    %370 = vector.load %arg10[%c1_141, %c0_142, %c0_143] : memref<3x4x32xf32, #tpu.memory_space<vmem>>, vector<1x4x32xf32>
    %371 = vector.shape_cast %370 : vector<1x4x32xf32> to vector<4x32xf32>
    %372 = vector.shape_cast %369 : vector<4x32xf32> to vector<1x4x32xf32>
    tpu.vector_store %arg10[%c1_141, %c0_142, %c0_143], %372 {strides = array<i32>} : memref<3x4x32xf32, #tpu.memory_space<vmem>>, vector<1x4x32xf32>,
    %373 = vector.extract_strided_slice %355 {offsets = [0, 64], sizes = [4, 32], strides = [1, 1]} : vector<4x128xf32> to vector<4x32xf32>
    %c2_144 = arith.constant 2 : index
    %c0_145 = arith.constant 0 : index
    %c0_146 = arith.constant 0 : index
    %374 = vector.load %arg9[%c2_144, %c0_145, %c0_146] : memref<3x4x32xf32, #tpu.memory_space<vmem>>, vector<1x4x32xf32>
    %375 = vector.shape_cast %374 : vector<1x4x32xf32> to vector<4x32xf32>
    %376 = vector.shape_cast %373 : vector<4x32xf32> to vector<1x4x32xf32>
    tpu.vector_store %arg9[%c2_144, %c0_145, %c0_146], %376 {strides = array<i32>} : memref<3x4x32xf32, #tpu.memory_space<vmem>>, vector<1x4x32xf32>,
    %377 = vector.extract_strided_slice %356 {offsets = [0, 64], sizes = [4, 32], strides = [1, 1]} : vector<4x128xf32> to vector<4x32xf32>
    %c2_147 = arith.constant 2 : index
    %c0_148 = arith.constant 0 : index
    %c0_149 = arith.constant 0 : index
    %378 = vector.load %arg10[%c2_147, %c0_148, %c0_149] : memref<3x4x32xf32, #tpu.memory_space<vmem>>, vector<1x4x32xf32>
    %379 = vector.shape_cast %378 : vector<1x4x32xf32> to vector<4x32xf32>
    %380 = vector.shape_cast %377 : vector<4x32xf32> to vector<1x4x32xf32>
    tpu.vector_store %arg10[%c2_147, %c0_148, %c0_149], %380 {strides = array<i32>} : memref<3x4x32xf32, #tpu.memory_space<vmem>>, vector<1x4x32xf32>,
    %c0_150 = arith.constant 0 : index
    %c0_151 = arith.constant 0 : index
    %381 = vector.load %arg6[%c0_150, %c0_151] : memref<1x128xf32, #tpu.memory_space<vmem>>, vector<1x128xf32>
    %382 = vector.broadcast %381 : vector<1x128xf32> to vector<4x128xf32>
    %383 = arith.mulf %355, %382 : vector<4x128xf32>
    %cst_152 = arith.constant dense<0.000000e+00> : vector<4xf32>
    %384 = vector.multi_reduction <add>, %383, %cst_152 [1] : vector<4x128xf32> to vector<4xf32>
    %385 = vector.shape_cast %384 : vector<4xf32> to vector<4x1xf32>
    %c0_153 = arith.constant 0 : index
    %c0_154 = arith.constant 0 : index
    %386 = vector.load %arg7[%c0_153, %c0_154] : memref<1x1xf32, #tpu.memory_space<vmem>>, vector<1x1xf32>
    %387 = vector.broadcast %386 : vector<1x1xf32> to vector<4x1xf32>
    %388 = arith.addf %385, %387 : vector<4x1xf32>
    %c0_155 = arith.constant 0 : index
    %c0_156 = arith.constant 0 : index
    %389 = vector.load %arg8[%c0_155, %c0_156] : memref<4x1xf32, #tpu.memory_space<vmem>>, vector<4x1xf32>
    tpu.vector_store %arg8[%c0_155, %c0_156], %388 {strides = array<i32>} : memref<4x1xf32, #tpu.memory_space<vmem>>, vector<4x1xf32>,
    return
  }
}

</mosaic_0001>

<bundles_post_ra>
// kernel: tpu_custom_call.1
= control target key start
LH: loop header
LB: loop body
LE: loop exit
PB: predicated region body
PF: predicated region fallthrough
CT: control target
= control target key end

     0   :  { %s3461_s0 = inlined_call_operand.vmem [shape: f32[8,4,1], index: 0, kind: input, shape index: {}]   ;;  %s3462_s1 = inlined_call_operand.vmem [shape: f32[3,4,32], index: 1, kind: input, shape index: {}]   ;;  %s3463_s2 = inlined_call_operand.vmem [shape: f32[3,4,32], index: 2, kind: input, shape index: {}]   ;;  %s3464_s3 = inlined_call_operand.hbm [shape: f32[128,512], index: 3, kind: input, shape index: {}]   ;;  %s3465_s4 = inlined_call_operand.vmem [shape: f32[1,512], index: 4, kind: input, shape index: {}]   ;;  %s3466_s5 = inlined_call_operand.vmem [shape: f32[1,512], index: 5, kind: input, shape index: {}]   ;;  %s3467_s6 = inlined_call_operand.vmem [shape: f32[1,128], index: 6, kind: input, shape index: {}]   ;;  %s3468_s7 = inlined_call_operand.<no memory space> [shape: f32[1,1], index: 7, kind: input, shape index: {}]   ;;  %s3469_s8 = inlined_call_operand.vmem [shape: f32[4,1], index: 8, kind: output, shape index: {0}]   ;;  %s3470_s9 = inlined_call_operand.hbm [shape: f32[3,4,32], index: 9, kind: output, shape index: {1}]   ;;  %s3471_s10 = inlined_call_operand.hbm [shape: f32[3,4,32], index: 10, kind: output, shape index: {2}]  }
   0x1   :  { %v16_v0 = vstv %s3468_s7 }
   0x2   :  { %17 = vst [vmem:[#allocation2] sm:$0x1] %v16_v0 }
   0x3   :  { %18 = vsyncpa [#allocation4], 0 }
   0x4   :  { %19 = vsyncpa [#allocation5], 0 }
   0x5   :  { %20 = vsyncpa [#allocation8], 0  ;;  %s2243_s15 = smov [#allocation3]  }
   0x6   :  { %s32_s16 = sshll.u32 %s2243_s15, 4  ;;  %s33_s16 = int_to_ptr.vmem [resolvable:$true] %s32_s16 }
   0x7   :  { %s2185_s17 = scalar_lea.vmem %s33_s16, 8192  ;;  %p2190_p1 = scmp.lt.s32.totalorder %s33_s16, %s33_s16 }
   0x8   :  { %p2186_p0 = scmp.ne.s32.totalorder %s33_s16, %s2185_s17  ;;  %p2191_p2 = scmp.lt.s32.totalorder %s2185_s17, %s2185_s17 }
   0xa   :  { %p2192_p3 = por %p2191_p2, %p2190_p1 }
   0xc   :  { %p2193_p4 = pnand %p2192_p3, %p2186_p0 }
   0xe   :  { %2196 = shalt.err (!%p2193_p4)
}
   0xf   :  { %s2244_s18 = smov 512   ;;  %s2245_s19 = smov 32  }
  0x10   :  { %38 = dma.hbm_to_vmem [thread:$0]  %s3464_s3, 8192, %s33_s16, [#allocation4], %s2244_s18, %s2244_s18, %s2245_s19  }
  0x11   :  { %2237 = dma.done.wait [#allocation4], 8192  }
  0x12   :  { %2238 = vsyncadd [#allocation4], 4294959104  ;;  %v3472_v1 = vmov 0.0   ;;  %v2247_v2 = vmov 0   ;;  %v1986_v3 = vld [vmem:[%s3462_s1 + $0x4] sm:$0xf] }
  0x13   :  { %271 = vmatprep.mubr.f32.mxu0 %v3472_v1  ;;  %342 = vmatprep.mubr.f32.mxu1 %v3472_v1  ;;  %v1987_v4 = vld [vmem:[%s3462_s1 + $0x8] sm:$0xf]  ;;  %v2327_v6 = vld [vmem:[#allocation3 + $0x1f8] sm:$0xff]  ;;  %v2331_v8 = vld [vmem:[#allocation3 + $0x1f0] sm:$0xff]  ;;  %s2248_s3 = smov 64   ;;  %vm63_vm0 = vcmask 261120  }
  0x14   :  { %2011 = vset.pattern.permute.xlu1 %v2247_v2  ;;  %2012 = vset.pattern.permute.xlu0 %v2247_v2  ;;  %v2323_v5 = vld [vmem:[#allocation3 + $0x1e8] sm:$0xff]  ;;  %3597 = vst [vmem:[#allocation13_spill] sm:$0xff] %v2327_v6  ;;  %v2329_v7 = vld [vmem:[#allocation3 + $0x1e0] sm:$0xff]  ;;  %v2337_v10 = vld [vmem:[#allocation3 + $0x1d8] sm:$0xff]  ;;  %vm65_vm1 = vcmask 523264   ;;  %vm67_vm2 = vcmask 785408  }
  0x15   :  { %3596 = vst [vmem:[#allocation12_spill] sm:$0xff] %v2323_v5  ;;  %56 = vrot.lane.b32.xlu0 %v1986_v3, %s2245_s19  ;;  %207 = vmatprep.subr.mxu0 %v2323_v5  ;;  %v2335_v9 = vld [vmem:[#allocation3 + $0x1c8] sm:$0xff]  ;;  %v2339_v11 = vld [vmem:[#allocation3 + $0x1c0] sm:$0xff]  ;;  %v2343_v12 = vld [vmem:[#allocation3 + $0x1d0] sm:$0xff]  ;;  %vm1902_vm10 = vcmask 257024   ;;  %vm1935_vm11 = vcmask 1043456  }
  0x16   :  { %278 = vmatprep.subr.mxu1 %v2327_v6  ;;  %208 = vmatpush1.msra.mxu0 %v2329_v7  ;;  %v2345_v13 = vld [vmem:[#allocation3 + $0x1a8] sm:$0xff]  ;;  %v2347_v14 = vld [vmem:[#allocation3 + $0x1b8] sm:$0xff]  ;;  %v2351_v15 = vld [vmem:[#allocation3 + $0x1a0] sm:$0xff]  ;;  %s2249_s29 = smov 96   ;;  %s2250_s30 = smov [#allocation6]  }
  0x17   :  { %279 = vmatpush1.msra.mxu1 %v2331_v8  ;;  %209 = vmatprep.subr.mxu0 %v2335_v9  ;;  %v2353_v16 = vld [vmem:[#allocation3 + $0x1b0] sm:$0xff]  ;;  %v2357_v17 = vld [vmem:[#allocation3 + $0x188] sm:$0xff]  ;;  %v2359_v18 = vld [vmem:[#allocation3 + $0x198] sm:$0xff]  ;;  %s2251_s11 = smov [#allocation7]  }
  0x18   :  { %280 = vmatprep.subr.mxu1 %v2337_v10  ;;  %210 = vmatpush1.msra.mxu0 %v2339_v11  ;;  %v2363_v19 = vld [vmem:[#allocation3 + $0x180] sm:$0xff]  ;;  %v2365_v20 = vld [vmem:[#allocation3 + $0x190] sm:$0xff]  ;;  %v2369_v21 = vld [vmem:[#allocation3 + $0x168] sm:$0xff]  ;;  %s1968_s12 = sshll.u32 %s2251_s11, 4  ;;  %s1969_s12 = int_to_ptr.vmem [resolvable:$true] %s1968_s12 }
  0x19   :  { %60 = vrot.lane.b32.xlu0 %v1987_v4, %s2248_s3  ;;  %281 = vmatpush1.msra.mxu1 %v2343_v12  ;;  %v2371_v22 = vld [vmem:[#allocation3 + $0x178] sm:$0xff]  ;;  %v2375_v23 = vld [vmem:[#allocation3 + $0x160] sm:$0xff]  ;;  %v2377_v24 = vld [vmem:[#allocation3 + $0x170] sm:$0xff] }
  0x1a   :  { %211 = vmatprep.subr.mxu0 %v2345_v13  ;;  %282 = vmatprep.subr.mxu1 %v2347_v14  ;;  %v2381_v25 = vld [vmem:[#allocation3 + $0x148] sm:$0xff]  ;;  %v2383_v26 = vld [vmem:[#allocation3 + $0x158] sm:$0xff]  ;;  %v2387_v27 = vld [vmem:[#allocation3 + $0x140] sm:$0xff] }
  0x1b   :  { %212 = vmatpush1.msra.mxu0 %v2351_v15  ;;  %283 = vmatpush1.msra.mxu1 %v2353_v16  ;;  %v2389_v28 = vld [vmem:[#allocation3 + $0x150] sm:$0xff]  ;;  %v2393_v29 = vld [vmem:[#allocation3 + $0x128] sm:$0xff]  ;;  %v2395_v30 = vld [vmem:[#allocation3 + $0x138] sm:$0xff] }
  0x1c   :  { %213 = vmatprep.subr.mxu0 %v2357_v17  ;;  %284 = vmatprep.subr.mxu1 %v2359_v18  ;;  %v2399_v31 = vld [vmem:[#allocation3 + $0x120] sm:$0xff]  ;;  %v2401_v32 = vld [vmem:[#allocation3 + $0x130] sm:$0xff]  ;;  %v2405_v33 = vld [vmem:[#allocation3 + $0x108] sm:$0xff] }
  0x1d   :  { %214 = vmatpush1.msra.mxu0 %v2363_v19  ;;  %285 = vmatpush1.msra.mxu1 %v2365_v20  ;;  %v2407_v34 = vld [vmem:[#allocation3 + $0x118] sm:$0xff]  ;;  %v2411_v35 = vld [vmem:[#allocation3 + $0x100] sm:$0xff]  ;;  %v2413_v36 = vld [vmem:[#allocation3 + $0x110] sm:$0xff] }
  0x1e   :  { %215 = vmatprep.subr.mxu0 %v2369_v21  ;;  %286 = vmatprep.subr.mxu1 %v2371_v22  ;;  %v2417_v37 = vld [vmem:[#allocation3 + $0xe8] sm:$0xff]  ;;  %v2419_v38 = vld [vmem:[#allocation3 + $0xf8] sm:$0xff]  ;;  %v2423_v39 = vld [vmem:[#allocation3 + $0xe0] sm:$0xff] }
  0x1f   :  { %216 = vmatpush1.msra.mxu0 %v2375_v23  ;;  %287 = vmatpush1.msra.mxu1 %v2377_v24  ;;  %v2425_v40 = vld [vmem:[#allocation3 + $0xf0] sm:$0xff]  ;;  %v2429_v41 = vld [vmem:[#allocation3 + $0xc8] sm:$0xff]  ;;  %v2431_v42 = vld [vmem:[#allocation3 + $0xd8] sm:$0xff] }
  0x20   :  { %217 = vmatprep.subr.mxu0 %v2381_v25  ;;  %288 = vmatprep.subr.mxu1 %v2383_v26  ;;  %v2435_v43 = vld [vmem:[#allocation3 + $0xc0] sm:$0xff]  ;;  %v2437_v44 = vld [vmem:[#allocation3 + $0xd0] sm:$0xff]  ;;  %v2441_v45 = vld [vmem:[#allocation3 + $0xa8] sm:$0xff] }
  0x21   :  { %218 = vmatpush1.msra.mxu0 %v2387_v27  ;;  %289 = vmatpush1.msra.mxu1 %v2389_v28  ;;  %v2443_v46 = vld [vmem:[#allocation3 + $0xb8] sm:$0xff]  ;;  %v2447_v47 = vld [vmem:[#allocation3 + $0xa0] sm:$0xff]  ;;  %v2449_v48 = vld [vmem:[#allocation3 + $0xb0] sm:$0xff] }
  0x22   :  { %219 = vmatprep.subr.mxu0 %v2393_v29  ;;  %290 = vmatprep.subr.mxu1 %v2395_v30  ;;  %3598 = vst [vmem:[#allocation14_spill] sm:$0xff] %v2443_v46  ;;  %3599 = vst [vmem:[#allocation15_spill] sm:$0xff] %v2447_v47  ;;  %v2453_v49 = vld [vmem:[#allocation3 + $0x88] sm:$0xff]  ;;  %v2455_v50 = vld [vmem:[#allocation3 + $0x98] sm:$0xff] }
  0x23   :  { %220 = vmatpush1.msra.mxu0 %v2399_v31  ;;  %291 = vmatpush1.msra.mxu1 %v2401_v32  ;;  %3600 = vst [vmem:[#allocation16_spill] sm:$0xff] %v2449_v48  ;;  %3601 = vst [vmem:[#allocation17_spill] sm:$0xff] %v2453_v49  ;;  %v2459_v51 = vld [vmem:[#allocation3 + $0x80] sm:$0xff]  ;;  %v2461_v52 = vld [vmem:[#allocation3 + $0x90] sm:$0xff] }
  0x24   :  { %221 = vmatprep.subr.mxu0 %v2405_v33  ;;  %292 = vmatprep.subr.mxu1 %v2407_v34  ;;  %3602 = vst [vmem:[#allocation18_spill] sm:$0xff] %v2455_v50  ;;  %3603 = vst [vmem:[#allocation19_spill] sm:$0xff] %v2459_v51  ;;  %v2465_v53 = vld [vmem:[#allocation3 + $0x68] sm:$0xff]  ;;  %v2467_v54 = vld [vmem:[#allocation3 + $0x78] sm:$0xff] }
  0x25   :  { %222 = vmatpush1.msra.mxu0 %v2411_v35  ;;  %293 = vmatpush1.msra.mxu1 %v2413_v36  ;;  %3604 = vst [vmem:[#allocation20_spill] sm:$0xff] %v2461_v52  ;;  %3605 = vst [vmem:[#allocation21_spill] sm:$0xff] %v2465_v53  ;;  %v2471_v55 = vld [vmem:[#allocation3 + $0x60] sm:$0xff]  ;;  %v2473_v56 = vld [vmem:[#allocation3 + $0x70] sm:$0xff] }
  0x26   :  { %223 = vmatprep.subr.mxu0 %v2417_v37  ;;  %294 = vmatprep.subr.mxu1 %v2419_v38  ;;  %3606 = vst [vmem:[#allocation22_spill] sm:$0xff] %v2467_v54  ;;  %3607 = vst [vmem:[#allocation23_spill] sm:$0xff] %v2471_v55  ;;  %v2477_v57 = vld [vmem:[#allocation3 + $0x48] sm:$0xff]  ;;  %v2479_v58 = vld [vmem:[#allocation3 + $0x58] sm:$0xff] }
  0x27   :  { %224 = vmatpush1.msra.mxu0 %v2423_v39  ;;  %295 = vmatpush1.msra.mxu1 %v2425_v40  ;;  %3608 = vst [vmem:[#allocation24_spill] sm:$0xff] %v2473_v56  ;;  %3609 = vst [vmem:[#allocation25_spill] sm:$0xff] %v2477_v57  ;;  %v2483_v59 = vld [vmem:[#allocation3 + $0x40] sm:$0xff]  ;;  %v2485_v60 = vld [vmem:[#allocation3 + $0x50] sm:$0xff] }
  0x28   :  { %225 = vmatprep.subr.mxu0 %v2429_v41  ;;  %296 = vmatprep.subr.mxu1 %v2431_v42  ;;  %3610 = vst [vmem:[#allocation26_spill] sm:$0xff] %v2479_v58  ;;  %3611 = vst [vmem:[#allocation27_spill] sm:$0xff] %v2483_v59  ;;  %v2489_v61 = vld [vmem:[#allocation3 + $0x28] sm:$0xff]  ;;  %v2491_v62 = vld [vmem:[#allocation3 + $0x38] sm:$0xff] }
  0x29   :  { %226 = vmatpush1.msra.mxu0 %v2435_v43  ;;  %297 = vmatpush1.msra.mxu1 %v2437_v44  ;;  %3612 = vst [vmem:[#allocation28_spill] sm:$0xff] %v2485_v60  ;;  %3613 = vst [vmem:[#allocation29_spill] sm:$0xff] %v2489_v61  ;;  %v2495_v63 = vld [vmem:[#allocation3 + $0x20] sm:$0xff]  ;;  %v2497_v0 = vld [vmem:[#allocation3 + $0x30] sm:$0xff] }
  0x2a   :  { %227 = vmatprep.subr.mxu0 %v2441_v45  ;;  %298 = vmatprep.subr.mxu1 %v2443_v46  ;;  %3614 = vst [vmem:[#allocation30_spill] sm:$0xff] %v2491_v62  ;;  %3615 = vst [vmem:[#allocation31_spill] sm:$0xff] %v2495_v63  ;;  %v2501_v2 = vld [vmem:[#allocation3 + $0x8] sm:$0xff]  ;;  %v2503_v3 = vld [vmem:[#allocation3 + $0x18] sm:$0xff] }
  0x2b   :  { %228 = vmatpush1.msra.mxu0 %v2447_v47  ;;  %299 = vmatpush1.msra.mxu1 %v2449_v48  ;;  %3616 = vst [vmem:[#allocation32_spill] sm:$0xff] %v2497_v0  ;;  %3617 = vst [vmem:[#allocation33_spill] sm:$0xff] %v2501_v2  ;;  %v2507_v4 = vld [vmem:[#allocation3] sm:$0xff]  ;;  %v2509_v1 = vld [vmem:[#allocation3 + $0x10] sm:$0xff] }
  0x2c   :  { %229 = vmatprep.subr.mxu0 %v2453_v49  ;;  %300 = vmatprep.subr.mxu1 %v2455_v50  ;;  %3618 = vst [vmem:[#allocation34_spill] sm:$0xff] %v2503_v3  ;;  %3619 = vst [vmem:[#allocation35_spill] sm:$0xff] %v2507_v4 }
  0x2d   :  { %230 = vmatpush1.msra.mxu0 %v2459_v51  ;;  %301 = vmatpush1.msra.mxu1 %v2461_v52  ;;  %3620 = vst [vmem:[#allocation36_spill] sm:$0xff] %v2509_v1 }
  0x2e   :  { %231 = vmatprep.subr.mxu0 %v2465_v53  ;;  %302 = vmatprep.subr.mxu1 %v2467_v54 }
  0x2f   :  { %232 = vmatpush1.msra.mxu0 %v2471_v55  ;;  %303 = vmatpush1.msra.mxu1 %v2473_v56 }
  0x30   :  { %233 = vmatprep.subr.mxu0 %v2477_v57  ;;  %304 = vmatprep.subr.mxu1 %v2479_v58 }
  0x31   :  { %234 = vmatpush1.msra.mxu0 %v2483_v59  ;;  %305 = vmatpush1.msra.mxu1 %v2485_v60  ;;  %v87_v60 = vld [vmem:[%s3461_s0] sm:$0xf]  ;;  %v1989_v59 = vld [vmem:[%s3463_s2 + $0x8] sm:$0xf] }
  0x32   :  { %235 = vmatprep.subr.mxu0 %v2489_v61  ;;  %306 = vmatprep.subr.mxu1 %v2491_v62 }
  0x33   :  { %236 = vmatpush1.msra.mxu0 %v2495_v63  ;;  %307 = vmatpush1.msra.mxu1 %v2497_v0  ;;  %v1988_v0 = vld [vmem:[%s3463_s2 + $0x4] sm:$0xf] }
  0x34   :  { %237 = vmatprep.subr.mxu0 %v2501_v2  ;;  %308 = vmatprep.subr.mxu1 %v2503_v3  ;;  %v1992_v3 = vld [vmem:[%s3461_s0 + $0x4] sm:$0xf] }
  0x35   :  { %238 = vmatpush1.msra.mxu0 %v2507_v4  ;;  %309 = vmatpush1.msra.mxu1 %v2509_v1 }
  0x36   :  { %90 = vperm.xlu1 %2011, %v87_v60   ;;  %79 = vrot.lane.b32.xlu0 %v1989_v59, %s2248_s3  ;;  %v1994_v60 = vld [vmem:[%s3461_s0 + $0xc] sm:$0xf]  ;;  %v1995_v59 = vld [vmem:[%s3461_s0 + $0x10] sm:$0xf] }
  0x37   :  { %386 = vmatprep.subr.mxu0 %v2323_v5  ;;  %457 = vmatprep.subr.mxu1 %v2327_v6  ;;  %v1997_v6 = vld [vmem:[%s3461_s0 + $0x18] sm:$0xf] }
  0x3a   :  { %75 = vrot.lane.b32.xlu1 %v1988_v0, %s2245_s19 }
  0x3e   :  { %375 = vperm.xlu1 %2011, %v1992_v3   ;;  %v50_v3 = vld [vmem:[%s3462_s1] sm:$0xf] }
  0x42   :  { %723 = vperm.xlu1 %2011, %v1994_v60  }
  0x46   :  { %895 = vperm.xlu1 %2011, %v1995_v59   ;;  %v3623_v59 = vld [vmem:[#allocation32_spill] sm:$0xff] }
  0x4a   :  { %1239 = vperm.xlu1 %2011, %v1997_v6   ;;  %v3622_v6 = vld [vmem:[#allocation28_spill] sm:$0xff] }
  0x87   :  { %v57_v0 = vpop.permute.xlu0 %56 }
  0x88   :  { %v64_v60 = vsel %vm63_vm0, %v50_v3, %v57_v0  ;;  %v3624_v0 = vld [vmem:[#allocation34_spill] sm:$0xff]  ;;  %v3625_v3 = vmov 0.0  }
  0x8b   :  { %v61_v5 = vpop.permute.xlu0 %60 }
  0x8c   :  { %v2547_v1 = vsel %vm65_vm1, %v64_v60, %v61_v5  ;;  %v3621_v5 = vld [vmem:[#allocation27_spill] sm:$0xff]  ;;  %v3626_v60 = vld [vmem:[#allocation36_spill] sm:$0xff] }
  0x8d   :  { %1990 = vmatmul.mubr.msk.f32.vlgmr.msra.gmra.mxu0 %vm67_vm2, %v2547_v1  ;;  %1991 = vmatmul.mubr.msk.f32.vlgmr.msra.gmra.mxu1 %vm67_vm2, %v2547_v1 }
  0x8e   :  { %387 = vmatpush1.msra.mxu0 %v2329_v7  ;;  %458 = vmatpush1.msra.mxu1 %v2331_v8 }
  0x8f   :  { %388 = vmatprep.subr.mxu0 %v2335_v9  ;;  %459 = vmatprep.subr.mxu1 %v2337_v10 }
  0x90   :  { %389 = vmatpush1.msra.mxu0 %v2339_v11  ;;  %460 = vmatpush1.msra.mxu1 %v2343_v12 }
  0x91   :  { %390 = vmatprep.subr.mxu0 %v2345_v13  ;;  %461 = vmatprep.subr.mxu1 %v2347_v14 }
  0x92   :  { %391 = vmatpush1.msra.mxu0 %v2351_v15  ;;  %462 = vmatpush1.msra.mxu1 %v2353_v16 }
  0x93   :  { %392 = vmatprep.subr.mxu0 %v2357_v17  ;;  %463 = vmatprep.subr.mxu1 %v2359_v18 }
  0x94   :  { %393 = vmatpush1.msra.mxu0 %v2363_v19  ;;  %464 = vmatpush1.msra.mxu1 %v2365_v20 }
  0x95   :  { %394 = vmatprep.subr.mxu0 %v2369_v21  ;;  %465 = vmatprep.subr.mxu1 %v2371_v22 }
  0x96   :  { %395 = vmatpush1.msra.mxu0 %v2375_v23  ;;  %466 = vmatpush1.msra.mxu1 %v2377_v24 }
  0x97   :  { %396 = vmatprep.subr.mxu0 %v2381_v25  ;;  %467 = vmatprep.subr.mxu1 %v2383_v26 }
  0x98   :  { %397 = vmatpush1.msra.mxu0 %v2387_v27  ;;  %468 = vmatpush1.msra.mxu1 %v2389_v28 }
  0x99   :  { %398 = vmatprep.subr.mxu0 %v2393_v29  ;;  %469 = vmatprep.subr.mxu1 %v2395_v30 }
  0x9a   :  { %399 = vmatpush1.msra.mxu0 %v2399_v31  ;;  %470 = vmatpush1.msra.mxu1 %v2401_v32 }
  0x9b   :  { %400 = vmatprep.subr.mxu0 %v2405_v33  ;;  %471 = vmatprep.subr.mxu1 %v2407_v34 }
  0x9c   :  { %401 = vmatpush1.msra.mxu0 %v2411_v35  ;;  %472 = vmatpush1.msra.mxu1 %v2413_v36 }
  0x9d   :  { %402 = vmatprep.subr.mxu0 %v2417_v37  ;;  %473 = vmatprep.subr.mxu1 %v2419_v38 }
  0x9e   :  { %403 = vmatpush1.msra.mxu0 %v2423_v39  ;;  %474 = vmatpush1.msra.mxu1 %v2425_v40 }
  0x9f   :  { %404 = vmatprep.subr.mxu0 %v2429_v41  ;;  %475 = vmatprep.subr.mxu1 %v2431_v42 }
  0xa0   :  { %405 = vmatpush1.msra.mxu0 %v2435_v43  ;;  %476 = vmatpush1.msra.mxu1 %v2437_v44 }
  0xa1   :  { %406 = vmatprep.subr.mxu0 %v2441_v45  ;;  %477 = vmatprep.subr.mxu1 %v2443_v46 }
  0xa2   :  { %407 = vmatpush1.msra.mxu0 %v2447_v47  ;;  %478 = vmatpush1.msra.mxu1 %v2449_v48 }
  0xa3   :  { %408 = vmatprep.subr.mxu0 %v2453_v49  ;;  %479 = vmatprep.subr.mxu1 %v2455_v50 }
  0xa4   :  { %409 = vmatpush1.msra.mxu0 %v2459_v51  ;;  %480 = vmatpush1.msra.mxu1 %v2461_v52 }
  0xa5   :  { %410 = vmatprep.subr.mxu0 %v2465_v53  ;;  %481 = vmatprep.subr.mxu1 %v2467_v54 }
  0xa6   :  { %411 = vmatpush1.msra.mxu0 %v2471_v55  ;;  %482 = vmatpush1.msra.mxu1 %v2473_v56 }
  0xa7   :  { %412 = vmatprep.subr.mxu0 %v2477_v57  ;;  %483 = vmatprep.subr.mxu1 %v2479_v58 }
  0xa8   :  { %413 = vmatpush1.msra.mxu0 %v3621_v5  ;;  %484 = vmatpush1.msra.mxu1 %v3622_v6  ;;  %v3627_v6 = vld [vmem:[#allocation12_spill] sm:$0xff] }
  0xa9   :  { %414 = vmatprep.subr.mxu0 %v2489_v61  ;;  %485 = vmatprep.subr.mxu1 %v2491_v62  ;;  %v3628_v61 = vld [vmem:[#allocation13_spill] sm:$0xff]  ;;  %v94_v62 = vlaneseq }
  0xaa   :  { %415 = vmatpush1.msra.mxu0 %v2495_v63  ;;  %486 = vmatpush1.msra.mxu1 %v3623_v59 }
  0xab   :  { %416 = vmatprep.subr.mxu0 %v2501_v2  ;;  %487 = vmatprep.subr.mxu1 %v3624_v0  ;;  %v95_v63 = vshrl.u32 %v94_v62, 7  ;;  %v86_v2 = vld [vmem:[%s3466_s5] sm:$0xf] }
  0xac   :  { %417 = vmatpush1.msra.mxu0 %v2507_v4  ;;  %450 = vmatprep.mubr.f32.mxu0 %v3625_v3 }
  0xad   :  { %488 = vmatpush1.msra.mxu1 %v3626_v60  ;;  %521 = vmatprep.mubr.f32.mxu1 %v3625_v3  ;;  %v96_v5 = vsub.s32 0, %v95_v63  ;;  %v100_v0 = vsub.s32 1, %v95_v63  ;;  %v104_v4 = vsub.s32 2, %v95_v63  ;;  %v85_v60 = vld [vmem:[%s3465_s4] sm:$0xf]  ;;  %v108_v50 = vsub.s32 3, %v95_v63 }
  0xae   :  { %562 = vmatprep.subr.mxu0 %v3627_v6  ;;  %633 = vmatprep.subr.mxu1 %v3628_v61 }
  0xaf   :  { %v2622_v59 = vrot.slane %v86_v2, %v96_v5  ;;  %v2627_v3 = vrot.slane %v86_v2, %v100_v0  ;;  %v2630_v58 = vrot.slane %v85_v60, %v96_v5  ;;  %v2632_v57 = vrot.slane %v86_v2, %v104_v4 }
  0xb0   :  { %v2635_v55 = vrot.slane %v85_v60, %v100_v0  ;;  %v2639_v52 = vrot.slane %v85_v60, %v104_v4 }
  0xb1   :  { %3629 = vst [vmem:[#allocation37_spill] sm:$0xff] %v2622_v59  ;;  %3630 = vst [vmem:[#allocation38_spill] sm:$0xff] %v2627_v3  ;;  %v91_v6 = vpop.permute.xlu1 %90 }
  0xb2   :  { %v114_v61 = vmul.f32 %v2622_v59, %v91_v6  ;;  %3631 = vst [vmem:[#allocation39_spill] sm:$0xff] %v2630_v58  ;;  %3632 = vst [vmem:[#allocation40_spill] sm:$0xff] %v2632_v57  ;;  %v115_v56 = vmul.f32 %v2627_v3, %v91_v6  ;;  %v116_v53 = vmul.f32 %v2632_v57, %v91_v6 }
  0xb3   :  { %3633 = vst [vmem:[#allocation41_spill] sm:$0xff] %v2635_v55  ;;  %v2643_v3 = vrot.slane %v86_v2, %v108_v50  ;;  %v2646_v57 = vrot.slane %v85_v60, %v108_v50 }
  0xb4   :  { %v139_v54 = vadd.f32 %v2630_v58, %v114_v61  ;;  %v140_v51 = vadd.f32 %v2635_v55, %v115_v56  ;;  %v141_v5 = vadd.f32 %v2639_v52, %v116_v53  ;;  %v69_v56 = vld [vmem:[%s3463_s2] sm:$0xf] }
  0xb5   :  { %v117_v61 = vmul.f32 %v2643_v3, %v91_v6  ;;  %3634 = vst [vmem:[#allocation42_spill] sm:$0xff] %v2646_v57 }
 0x14d   :  { %v273_v49 = vpop.f32.mrf.mxu0  ;;  %v344_v59 = vpop.f32.mrf.mxu1 }
 0x14e   :  { %v274_v48 = vadd.f32 %v273_v49, %v139_v54  ;;  %v345_v0 = vadd.f32 %v344_v59, %v141_v5  ;;  %v142_v49 = vadd.f32 %v2646_v57, %v117_v61  ;;  %v76_v54 = vpop.permute.xlu1 %75  ;;  %v2654_v59 = vand.u32 127, %v94_v62 }
 0x14f   :  { %v275_v47 = vpop.f32.mrf.mxu0  ;;  %v346_v53 = vpop.f32.mrf.mxu1  ;;  %v68_v62 = vsel %vm67_vm2, %v2547_v1, 0.0  ;;  %v3636_v1 = vld [vmem:[#allocation14_spill] sm:$0xff] }
 0x150   :  { %2013 = vtanh.f32 %v274_v48  ;;  %v276_v46 = vadd.f32 %v275_v47, %v140_v51  ;;  %v82_v48 = vsel %vm63_vm0, %v69_v56, %v76_v54  ;;  %v80_v47 = vpop.permute.xlu0 %79  ;;  %v347_v51 = vadd.f32 %v346_v53, %v142_v49  ;;  %3635 = vst [vmem:[#allocation43_spill] sm:$0xff] %v2654_v59 }
 0x151   :  { %vm367_vm3 = vcmp.lt.s32.totalorder %v2654_v59, 32  ;;  %vm543_vm4 = vcmp.lt.s32.totalorder %v2654_v59, 64  ;;  %v3686_v59 = vld [vmem:[#allocation34_spill] sm:$0xff] }
 0x152   :  { %2015 = vtanh.f32 %v276_v46  ;;  %v83_v46 = vsel %vm65_vm1, %v82_v48, %v80_v47 }
 0x153   :  { %2017 = vtanh.f32 %v345_v0  ;;  %v84_v60 = vsel %vm67_vm2, %v83_v46, 0.0  ;;  %v3639_v46 = vld [vmem:[#allocation17_spill] sm:$0xff] }
 0x154   :  { %2019 = vtanh.f32 %v347_v51 }
 0x15d   :  { %v2014_v63 = vpop.eup %2013 }
 0x15e   :  { %v353_v2 = vmul.f32 0.5, %v2014_v63 }
 0x15f   :  { %v2016_v4 = vpop.eup %2015 }
 0x160   :  { %v354_v50 = vadd.f32 0.5, %v353_v2  ;;  %v355_v6 = vmul.f32 0.5, %v2016_v4  ;;  %v2018_v0 = vpop.eup %2017  ;;  %v3638_v2 = vld [vmem:[#allocation16_spill] sm:$0xff]  ;;  %v3640_v4 = vld [vmem:[#allocation18_spill] sm:$0xff] }
 0x161   :  { %v2020_v53 = vpop.eup %2019 }
 0x162   :  { %v356_v5 = vadd.f32 0.5, %v355_v6  ;;  %v360_v57 = vmul.f32 %v2018_v0, %v354_v50  ;;  %v357_v54 = vmul.f32 0.5, %v2020_v53  ;;  %v3641_v50 = vld [vmem:[#allocation19_spill] sm:$0xff]  ;;  %v3642_v6 = vld [vmem:[#allocation20_spill] sm:$0xff]  ;;  %v3648_v53 = vld [vmem:[#allocation26_spill] sm:$0xff] }
 0x163   :  { %v3645_v0 = vld [vmem:[#allocation23_spill] sm:$0xff] }
 0x164   :  { %v359_v61 = vmul.f32 %v356_v5, %v84_v60  ;;  %v358_v48 = vadd.f32 0.5, %v357_v54  ;;  %v3644_v5 = vld [vmem:[#allocation22_spill] sm:$0xff]  ;;  %v3649_v54 = vld [vmem:[#allocation27_spill] sm:$0xff] }
 0x166   :  { %v361_v56 = vadd.f32 %v360_v57, %v359_v61  ;;  %v3637_v57 = vld [vmem:[#allocation15_spill] sm:$0xff]  ;;  %v3646_v61 = vld [vmem:[#allocation24_spill] sm:$0xff] }
 0x168   :  { %2021 = vtanh.f32 %v361_v56  ;;  %v2658_v49 = vsel %vm367_vm3, %v361_v56, %v84_v60  ;;  %v3643_v60 = vld [vmem:[#allocation21_spill] sm:$0xff] }
 0x169   :  { %v3647_v56 = vld [vmem:[#allocation25_spill] sm:$0xff] }
 0x175   :  { %v2022_v47 = vpop.eup %2021 }
 0x176   :  { %v363_v63 = vmul.f32 %v2022_v47, %v358_v48  ;;  %v3650_v48 = vld [vmem:[#allocation28_spill] sm:$0xff]  ;;  %v3651_v47 = vld [vmem:[#allocation29_spill] sm:$0xff] }
 0x178   :  { %v2662_v51 = vsel %vm367_vm3, %v363_v63, %v68_v62  ;;  %v3652_v63 = vld [vmem:[#allocation30_spill] sm:$0xff]  ;;  %v3653_v62 = vld [vmem:[#allocation31_spill] sm:$0xff] }
 0x179   :  { %451 = vmatmul.mubr.f32.vlgmr.msra.gmra.mxu0 %v2662_v51  ;;  %522 = vmatmul.mubr.f32.vlgmr.msra.gmra.mxu1 %v2662_v51 }
 0x17a   :  { %563 = vmatpush1.msra.mxu0 %v2329_v7  ;;  %634 = vmatpush1.msra.mxu1 %v2331_v8 }
 0x17b   :  { %564 = vmatprep.subr.mxu0 %v2335_v9  ;;  %635 = vmatprep.subr.mxu1 %v2337_v10 }
 0x17c   :  { %565 = vmatpush1.msra.mxu0 %v2339_v11  ;;  %636 = vmatpush1.msra.mxu1 %v2343_v12 }
 0x17d   :  { %566 = vmatprep.subr.mxu0 %v2345_v13  ;;  %637 = vmatprep.subr.mxu1 %v2347_v14 }
 0x17e   :  { %567 = vmatpush1.msra.mxu0 %v2351_v15  ;;  %638 = vmatpush1.msra.mxu1 %v2353_v16 }
 0x17f   :  { %568 = vmatprep.subr.mxu0 %v2357_v17  ;;  %639 = vmatprep.subr.mxu1 %v2359_v18 }
 0x180   :  { %569 = vmatpush1.msra.mxu0 %v2363_v19  ;;  %640 = vmatpush1.msra.mxu1 %v2365_v20 }
 0x181   :  { %570 = vmatprep.subr.mxu0 %v2369_v21  ;;  %641 = vmatprep.subr.mxu1 %v2371_v22 }
 0x182   :  { %571 = vmatpush1.msra.mxu0 %v2375_v23  ;;  %642 = vmatpush1.msra.mxu1 %v2377_v24 }
 0x183   :  { %572 = vmatprep.subr.mxu0 %v2381_v25  ;;  %643 = vmatprep.subr.mxu1 %v2383_v26 }
 0x184   :  { %573 = vmatpush1.msra.mxu0 %v2387_v27  ;;  %644 = vmatpush1.msra.mxu1 %v2389_v28 }
 0x185   :  { %574 = vmatprep.subr.mxu0 %v2393_v29  ;;  %645 = vmatprep.subr.mxu1 %v2395_v30 }
 0x186   :  { %575 = vmatpush1.msra.mxu0 %v2399_v31  ;;  %646 = vmatpush1.msra.mxu1 %v2401_v32 }
 0x187   :  { %576 = vmatprep.subr.mxu0 %v2405_v33  ;;  %647 = vmatprep.subr.mxu1 %v2407_v34 }
 0x188   :  { %577 = vmatpush1.msra.mxu0 %v2411_v35  ;;  %648 = vmatpush1.msra.mxu1 %v2413_v36 }
 0x189   :  { %578 = vmatprep.subr.mxu0 %v2417_v37  ;;  %649 = vmatprep.subr.mxu1 %v2419_v38 }
 0x18a   :  { %579 = vmatpush1.msra.mxu0 %v2423_v39  ;;  %650 = vmatpush1.msra.mxu1 %v2425_v40 }
 0x18b   :  { %580 = vmatprep.subr.mxu0 %v2429_v41  ;;  %651 = vmatprep.subr.mxu1 %v2431_v42 }
 0x18c   :  { %581 = vmatpush1.msra.mxu0 %v2435_v43  ;;  %652 = vmatpush1.msra.mxu1 %v2437_v44 }
 0x18d   :  { %582 = vmatprep.subr.mxu0 %v2441_v45  ;;  %653 = vmatprep.subr.mxu1 %v3636_v1 }
 0x18e   :  { %583 = vmatpush1.msra.mxu0 %v3637_v57  ;;  %654 = vmatpush1.msra.mxu1 %v3638_v2  ;;  %v3665_v57 = vld [vmem:[#allocation42_spill] sm:$0xff] }
 0x18f   :  { %584 = vmatprep.subr.mxu0 %v3639_v46  ;;  %655 = vmatprep.subr.mxu1 %v3640_v4 }
 0x190   :  { %585 = vmatpush1.msra.mxu0 %v3641_v50  ;;  %656 = vmatpush1.msra.mxu1 %v3642_v6 }
 0x191   :  { %586 = vmatprep.subr.mxu0 %v3643_v60  ;;  %657 = vmatprep.subr.mxu1 %v3644_v5  ;;  %v3654_v60 = vld [vmem:[#allocation32_spill] sm:$0xff]  ;;  %v3655_v5 = vld [vmem:[#allocation33_spill] sm:$0xff] }
 0x192   :  { %587 = vmatpush1.msra.mxu0 %v3645_v0  ;;  %658 = vmatpush1.msra.mxu1 %v3646_v61  ;;  %v3656_v0 = vld [vmem:[#allocation34_spill] sm:$0xff]  ;;  %v3657_v61 = vld [vmem:[#allocation35_spill] sm:$0xff] }
 0x193   :  { %588 = vmatprep.subr.mxu0 %v3647_v56  ;;  %659 = vmatprep.subr.mxu1 %v3648_v53  ;;  %v3658_v56 = vmov 0.0   ;;  %v3659_v53 = vld [vmem:[#allocation36_spill] sm:$0xff] }
 0x194   :  { %589 = vmatpush1.msra.mxu0 %v3649_v54  ;;  %660 = vmatpush1.msra.mxu1 %v3650_v48  ;;  %v3660_v48 = vld [vmem:[#allocation12_spill] sm:$0xff] }
 0x195   :  { %590 = vmatprep.subr.mxu0 %v3651_v47  ;;  %661 = vmatprep.subr.mxu1 %v3652_v63  ;;  %v3661_v47 = vld [vmem:[#allocation13_spill] sm:$0xff]  ;;  %v3664_v63 = vld [vmem:[#allocation40_spill] sm:$0xff] }
 0x196   :  { %591 = vmatpush1.msra.mxu0 %v3653_v62  ;;  %662 = vmatpush1.msra.mxu1 %v3654_v60  ;;  %v1993_v60 = vld [vmem:[%s3461_s0 + $0x8] sm:$0xf] }
 0x197   :  { %592 = vmatprep.subr.mxu0 %v3655_v5  ;;  %663 = vmatprep.subr.mxu1 %v3656_v0  ;;  %v1996_v0 = vld [vmem:[%s3461_s0 + $0x14] sm:$0xf]  ;;  %v3663_v5 = vld [vmem:[#allocation38_spill] sm:$0xff] }
 0x198   :  { %593 = vmatpush1.msra.mxu0 %v3657_v61  ;;  %626 = vmatprep.mubr.f32.mxu0 %v3658_v56  ;;  %v3662_v61 = vld [vmem:[#allocation37_spill] sm:$0xff] }
 0x199   :  { %664 = vmatpush1.msra.mxu1 %v3659_v53  ;;  %697 = vmatprep.mubr.f32.mxu1 %v3658_v56  ;;  %v1998_v53 = vld [vmem:[%s3461_s0 + $0x1c] sm:$0xf]  ;;  %v376_v56 = vpop.permute.xlu1 %375 }
 0x19a   :  { %734 = vmatprep.subr.mxu0 %v3660_v48  ;;  %805 = vmatprep.subr.mxu1 %v3661_v47  ;;  %v378_v48 = vmul.f32 %v376_v56, %v3662_v61  ;;  %v379_v47 = vmul.f32 %v376_v56, %v3663_v5  ;;  %v380_v54 = vmul.f32 %v376_v56, %v3664_v63 }
 0x19b   :  { %551 = vperm.xlu0 %2012, %v1993_v60   ;;  %v381_v61 = vmul.f32 %v376_v56, %v2643_v3 }
 0x19c   :  { %v382_v62 = vadd.f32 %v378_v48, %v2630_v58  ;;  %v383_v50 = vadd.f32 %v379_v47, %v2635_v55  ;;  %v384_v46 = vadd.f32 %v380_v54, %v2639_v52 }
 0x19d   :  { %v385_v48 = vadd.f32 %v381_v61, %v3665_v57 }
 0x19f   :  { %1067 = vperm.xlu0 %2012, %v1996_v0  }
 0x1a3   :  { %1411 = vperm.xlu0 %2012, %v1998_v53  }
 0x239   :  { %v452_v60 = vpop.f32.mrf.mxu0  ;;  %v523_v4 = vpop.f32.mrf.mxu1 }
 0x23a   :  { %v453_v6 = vadd.f32 %v452_v60, %v382_v62  ;;  %v524_v53 = vadd.f32 %v523_v4, %v384_v46 }
 0x23b   :  { %v454_v0 = vpop.f32.mrf.mxu0  ;;  %v525_v5 = vpop.f32.mrf.mxu1 }
 0x23c   :  { %2023 = vtanh.f32 %v453_v6  ;;  %v455_v2 = vadd.f32 %v454_v0, %v383_v50  ;;  %v526_v58 = vadd.f32 %v525_v5, %v385_v48  ;;  %v3670_v0 = vld [vmem:[#allocation18_spill] sm:$0xff]  ;;  %v3672_v48 = vld [vmem:[#allocation20_spill] sm:$0xff] }
 0x23e   :  { %2025 = vtanh.f32 %v455_v2 }
 0x23f   :  { %2027 = vtanh.f32 %v524_v53  ;;  %v3671_v53 = vld [vmem:[#allocation19_spill] sm:$0xff] }
 0x240   :  { %2029 = vtanh.f32 %v526_v58  ;;  %v3667_v58 = vld [vmem:[#allocation15_spill] sm:$0xff] }
 0x249   :  { %v2024_v63 = vpop.eup %2023 }
 0x24a   :  { %v532_v1 = vmul.f32 0.5, %v2024_v63 }
 0x24b   :  { %v2026_v62 = vpop.eup %2025 }
 0x24c   :  { %v533_v60 = vadd.f32 0.5, %v532_v1  ;;  %v534_v47 = vmul.f32 0.5, %v2026_v62  ;;  %v2028_v6 = vpop.eup %2027  ;;  %v3673_v62 = vld [vmem:[#allocation21_spill] sm:$0xff] }
 0x24d   :  { %v2030_v4 = vpop.eup %2029 }
 0x24e   :  { %v535_v55 = vadd.f32 0.5, %v534_v47  ;;  %v539_v50 = vmul.f32 %v2028_v6, %v533_v60  ;;  %v536_v5 = vmul.f32 0.5, %v2030_v4  ;;  %v3674_v60 = vld [vmem:[#allocation22_spill] sm:$0xff]  ;;  %v3675_v47 = vld [vmem:[#allocation23_spill] sm:$0xff]  ;;  %v3676_v6 = vld [vmem:[#allocation24_spill] sm:$0xff] }
 0x24f   :  { %v3680_v4 = vld [vmem:[#allocation28_spill] sm:$0xff] }
 0x250   :  { %v538_v54 = vmul.f32 %v535_v55, %v2658_v49  ;;  %v537_v61 = vadd.f32 0.5, %v536_v5  ;;  %v3666_v55 = vld [vmem:[#allocation14_spill] sm:$0xff]  ;;  %v3681_v5 = vld [vmem:[#allocation29_spill] sm:$0xff] }
 0x252   :  { %v540_v2 = vadd.f32 %v539_v50, %v538_v54  ;;  %v3677_v54 = vld [vmem:[#allocation25_spill] sm:$0xff]  ;;  %v3678_v50 = vld [vmem:[#allocation26_spill] sm:$0xff] }
 0x254   :  { %2031 = vtanh.f32 %v540_v2  ;;  %v2752_v46 = vsel %vm543_vm4, %v540_v2, %v2658_v49  ;;  %v3668_v49 = vld [vmem:[#allocation16_spill] sm:$0xff]  ;;  %v3679_v2 = vld [vmem:[#allocation27_spill] sm:$0xff] }
 0x261   :  { %v2032_v56 = vpop.eup %2031 }
 0x262   :  { %v542_v63 = vmul.f32 %v2032_v56, %v537_v61  ;;  %v3682_v61 = vld [vmem:[#allocation30_spill] sm:$0xff]  ;;  %v3683_v56 = vld [vmem:[#allocation31_spill] sm:$0xff] }
 0x264   :  { %v545_v1 = vsel %vm543_vm4, %v542_v63, %v2662_v51  ;;  %v3669_v51 = vld [vmem:[#allocation17_spill] sm:$0xff]  ;;  %v3684_v63 = vld [vmem:[#allocation32_spill] sm:$0xff] }
 0x265   :  { %627 = vmatmul.mubr.f32.vlgmr.msra.gmra.mxu0 %v545_v1  ;;  %698 = vmatmul.mubr.f32.vlgmr.msra.gmra.mxu1 %v545_v1  ;;  %v3685_v1 = vld [vmem:[#allocation33_spill] sm:$0xff] }
 0x266   :  { %735 = vmatpush1.msra.mxu0 %v2329_v7  ;;  %806 = vmatpush1.msra.mxu1 %v2331_v8 }
 0x267   :  { %736 = vmatprep.subr.mxu0 %v2335_v9  ;;  %807 = vmatprep.subr.mxu1 %v2337_v10 }
 0x268   :  { %737 = vmatpush1.msra.mxu0 %v2339_v11  ;;  %808 = vmatpush1.msra.mxu1 %v2343_v12 }
 0x269   :  { %738 = vmatprep.subr.mxu0 %v2345_v13  ;;  %809 = vmatprep.subr.mxu1 %v2347_v14 }
 0x26a   :  { %739 = vmatpush1.msra.mxu0 %v2351_v15  ;;  %810 = vmatpush1.msra.mxu1 %v2353_v16 }
 0x26b   :  { %740 = vmatprep.subr.mxu0 %v2357_v17  ;;  %811 = vmatprep.subr.mxu1 %v2359_v18 }
 0x26c   :  { %741 = vmatpush1.msra.mxu0 %v2363_v19  ;;  %812 = vmatpush1.msra.mxu1 %v2365_v20 }
 0x26d   :  { %742 = vmatprep.subr.mxu0 %v2369_v21  ;;  %813 = vmatprep.subr.mxu1 %v2371_v22 }
 0x26e   :  { %743 = vmatpush1.msra.mxu0 %v2375_v23  ;;  %814 = vmatpush1.msra.mxu1 %v2377_v24 }
 0x26f   :  { %744 = vmatprep.subr.mxu0 %v2381_v25  ;;  %815 = vmatprep.subr.mxu1 %v2383_v26 }
 0x270   :  { %745 = vmatpush1.msra.mxu0 %v2387_v27  ;;  %816 = vmatpush1.msra.mxu1 %v2389_v28 }
 0x271   :  { %746 = vmatprep.subr.mxu0 %v2393_v29  ;;  %817 = vmatprep.subr.mxu1 %v2395_v30 }
 0x272   :  { %747 = vmatpush1.msra.mxu0 %v2399_v31  ;;  %818 = vmatpush1.msra.mxu1 %v2401_v32 }
 0x273   :  { %748 = vmatprep.subr.mxu0 %v2405_v33  ;;  %819 = vmatprep.subr.mxu1 %v2407_v34 }
 0x274   :  { %749 = vmatpush1.msra.mxu0 %v2411_v35  ;;  %820 = vmatpush1.msra.mxu1 %v2413_v36 }
 0x275   :  { %750 = vmatprep.subr.mxu0 %v2417_v37  ;;  %821 = vmatprep.subr.mxu1 %v2419_v38 }
 0x276   :  { %751 = vmatpush1.msra.mxu0 %v2423_v39  ;;  %822 = vmatpush1.msra.mxu1 %v2425_v40 }
 0x277   :  { %752 = vmatprep.subr.mxu0 %v2429_v41  ;;  %823 = vmatprep.subr.mxu1 %v2431_v42 }
 0x278   :  { %753 = vmatpush1.msra.mxu0 %v2435_v43  ;;  %824 = vmatpush1.msra.mxu1 %v2437_v44 }
 0x279   :  { %754 = vmatprep.subr.mxu0 %v2441_v45  ;;  %825 = vmatprep.subr.mxu1 %v3666_v55 }
 0x27a   :  { %755 = vmatpush1.msra.mxu0 %v3667_v58  ;;  %826 = vmatpush1.msra.mxu1 %v3668_v49 }
 0x27b   :  { %756 = vmatprep.subr.mxu0 %v3669_v51  ;;  %827 = vmatprep.subr.mxu1 %v3670_v0 }
 0x27c   :  { %757 = vmatpush1.msra.mxu0 %v3671_v53  ;;  %828 = vmatpush1.msra.mxu1 %v3672_v48 }
 0x27d   :  { %758 = vmatprep.subr.mxu0 %v3673_v62  ;;  %829 = vmatprep.subr.mxu1 %v3674_v60 }
 0x27e   :  { %759 = vmatpush1.msra.mxu0 %v3675_v47  ;;  %830 = vmatpush1.msra.mxu1 %v3676_v6  ;;  %v3687_v6 = vld [vmem:[#allocation35_spill] sm:$0xff] }
 0x27f   :  { %760 = vmatprep.subr.mxu0 %v3677_v54  ;;  %831 = vmatprep.subr.mxu1 %v3678_v50  ;;  %v3688_v54 = vmov 0.0   ;;  %v3689_v50 = vld [vmem:[#allocation36_spill] sm:$0xff] }
 0x280   :  { %761 = vmatpush1.msra.mxu0 %v3679_v2  ;;  %832 = vmatpush1.msra.mxu1 %v3680_v4  ;;  %v3690_v4 = vld [vmem:[#allocation12_spill] sm:$0xff] }
 0x281   :  { %762 = vmatprep.subr.mxu0 %v3681_v5  ;;  %833 = vmatprep.subr.mxu1 %v3682_v61  ;;  %v3691_v5 = vld [vmem:[#allocation13_spill] sm:$0xff]  ;;  %v552_v61 = vpop.permute.xlu0 %551 }
 0x282   :  { %763 = vmatpush1.msra.mxu0 %v3683_v56  ;;  %834 = vmatpush1.msra.mxu1 %v3684_v63  ;;  %v3692_v56 = vld [vmem:[#allocation37_spill] sm:$0xff]  ;;  %v3693_v63 = vld [vmem:[#allocation38_spill] sm:$0xff] }
 0x283   :  { %764 = vmatprep.subr.mxu0 %v3685_v1  ;;  %835 = vmatprep.subr.mxu1 %v3686_v59  ;;  %v554_v2 = vmul.f32 %v552_v61, %v3692_v56  ;;  %v555_v47 = vmul.f32 %v552_v61, %v3693_v63  ;;  %v3694_v1 = vld [vmem:[#allocation39_spill] sm:$0xff]  ;;  %v3695_v59 = vld [vmem:[#allocation40_spill] sm:$0xff]  ;;  %v557_v56 = vmul.f32 %v552_v61, %v2643_v3 }
 0x284   :  { %765 = vmatpush1.msra.mxu0 %v3687_v6  ;;  %798 = vmatprep.mubr.f32.mxu0 %v3688_v54  ;;  %v556_v62 = vmul.f32 %v552_v61, %v3695_v59  ;;  %v3696_v6 = vld [vmem:[#allocation41_spill] sm:$0xff] }
 0x285   :  { %836 = vmatpush1.msra.mxu1 %v3689_v50  ;;  %869 = vmatprep.mubr.f32.mxu1 %v3688_v54  ;;  %v558_v60 = vadd.f32 %v554_v2, %v3694_v1  ;;  %v559_v48 = vadd.f32 %v555_v47, %v3696_v6  ;;  %v561_v63 = vadd.f32 %v557_v56, %v3665_v57 }
 0x286   :  { %906 = vmatprep.subr.mxu0 %v3690_v4  ;;  %977 = vmatprep.subr.mxu1 %v3691_v5  ;;  %v560_v50 = vadd.f32 %v556_v62, %v2639_v52 }
 0x325   :  { %v628_v53 = vpop.f32.mrf.mxu0  ;;  %v699_v54 = vpop.f32.mrf.mxu1 }
 0x326   :  { %v629_v0 = vadd.f32 %v628_v53, %v558_v60  ;;  %v700_v5 = vadd.f32 %v699_v54, %v560_v50 }
 0x327   :  { %v630_v51 = vpop.f32.mrf.mxu0  ;;  %v701_v2 = vpop.f32.mrf.mxu1 }
 0x328   :  { %2033 = vtanh.f32 %v629_v0  ;;  %v631_v4 = vadd.f32 %v630_v51, %v559_v48  ;;  %v702_v1 = vadd.f32 %v701_v2, %v561_v63 }
 0x32a   :  { %2035 = vtanh.f32 %v631_v4 }
 0x32b   :  { %2037 = vtanh.f32 %v700_v5 }
 0x32c   :  { %2039 = vtanh.f32 %v702_v1 }
 0x335   :  { %v2034_v59 = vpop.eup %2033 }
 0x336   :  { %v708_v49 = vmul.f32 0.5, %v2034_v59 }
 0x337   :  { %v2036_v47 = vpop.eup %2035 }
 0x338   :  { %v709_v6 = vadd.f32 0.5, %v708_v49  ;;  %v710_v53 = vmul.f32 0.5, %v2036_v47  ;;  %v2038_v60 = vpop.eup %2037 }
 0x339   :  { %v2040_v54 = vpop.eup %2039 }
 0x33a   :  { %v711_v62 = vadd.f32 0.5, %v710_v53  ;;  %v715_v51 = vmul.f32 %v2038_v60, %v709_v6  ;;  %v712_v50 = vmul.f32 0.5, %v2040_v54 }
 0x33c   :  { %v714_v0 = vmul.f32 %v711_v62, %v2752_v46  ;;  %v713_v61 = vadd.f32 0.5, %v712_v50 }
 0x33e   :  { %v2830_v48 = vadd.f32 %v715_v51, %v714_v0 }
 0x340   :  { %2041 = vtanh.f32 %v2830_v48 }
 0x34d   :  { %v2042_v56 = vpop.eup %2041 }
 0x34e   :  { %v718_v63 = vmul.f32 %v2042_v56, %v713_v61 }
 0x350   :  { %799 = vmatmul.mubr.f32.vlgmr.msra.gmra.mxu0 %v718_v63  ;;  %870 = vmatmul.mubr.f32.vlgmr.msra.gmra.mxu1 %v718_v63 }
 0x351   :  { %907 = vmatpush1.msra.mxu0 %v2329_v7  ;;  %978 = vmatpush1.msra.mxu1 %v2331_v8  ;;  %v3697_v7 = vld [vmem:[#allocation16_spill] sm:$0xff]  ;;  %v3698_v8 = vld [vmem:[#allocation17_spill] sm:$0xff] }
 0x352   :  { %908 = vmatprep.subr.mxu0 %v2335_v9  ;;  %979 = vmatprep.subr.mxu1 %v2337_v10  ;;  %v3699_v9 = vld [vmem:[#allocation18_spill] sm:$0xff]  ;;  %v3700_v10 = vld [vmem:[#allocation19_spill] sm:$0xff] }
 0x353   :  { %909 = vmatpush1.msra.mxu0 %v2339_v11  ;;  %980 = vmatpush1.msra.mxu1 %v2343_v12  ;;  %v3701_v11 = vld [vmem:[#allocation20_spill] sm:$0xff]  ;;  %v3702_v12 = vld [vmem:[#allocation21_spill] sm:$0xff] }
 0x354   :  { %910 = vmatprep.subr.mxu0 %v2345_v13  ;;  %981 = vmatprep.subr.mxu1 %v2347_v14  ;;  %v3703_v13 = vld [vmem:[#allocation22_spill] sm:$0xff]  ;;  %v3704_v14 = vld [vmem:[#allocation23_spill] sm:$0xff] }
 0x355   :  { %911 = vmatpush1.msra.mxu0 %v2351_v15  ;;  %982 = vmatpush1.msra.mxu1 %v2353_v16  ;;  %v3705_v15 = vld [vmem:[#allocation24_spill] sm:$0xff]  ;;  %v3706_v16 = vld [vmem:[#allocation25_spill] sm:$0xff] }
 0x356   :  { %912 = vmatprep.subr.mxu0 %v2357_v17  ;;  %983 = vmatprep.subr.mxu1 %v2359_v18  ;;  %v3707_v17 = vld [vmem:[#allocation26_spill] sm:$0xff]  ;;  %v3708_v18 = vld [vmem:[#allocation27_spill] sm:$0xff] }
 0x357   :  { %913 = vmatpush1.msra.mxu0 %v2363_v19  ;;  %984 = vmatpush1.msra.mxu1 %v2365_v20  ;;  %v3709_v19 = vld [vmem:[#allocation28_spill] sm:$0xff]  ;;  %v3710_v20 = vld [vmem:[#allocation29_spill] sm:$0xff] }
 0x358   :  { %914 = vmatprep.subr.mxu0 %v2369_v21  ;;  %985 = vmatprep.subr.mxu1 %v2371_v22  ;;  %v3711_v21 = vld [vmem:[#allocation30_spill] sm:$0xff]  ;;  %v3712_v22 = vld [vmem:[#allocation31_spill] sm:$0xff] }
 0x359   :  { %915 = vmatpush1.msra.mxu0 %v2375_v23  ;;  %986 = vmatpush1.msra.mxu1 %v2377_v24  ;;  %v3713_v23 = vld [vmem:[#allocation32_spill] sm:$0xff]  ;;  %v3714_v24 = vld [vmem:[#allocation33_spill] sm:$0xff] }
 0x35a   :  { %916 = vmatprep.subr.mxu0 %v2381_v25  ;;  %987 = vmatprep.subr.mxu1 %v2383_v26  ;;  %v3715_v25 = vld [vmem:[#allocation34_spill] sm:$0xff]  ;;  %v3716_v26 = vld [vmem:[#allocation35_spill] sm:$0xff] }
 0x35b   :  { %917 = vmatpush1.msra.mxu0 %v2387_v27  ;;  %988 = vmatpush1.msra.mxu1 %v2389_v28  ;;  %v3717_v27 = vmov 0.0   ;;  %v3718_v28 = vld [vmem:[#allocation36_spill] sm:$0xff] }
 0x35c   :  { %918 = vmatprep.subr.mxu0 %v2393_v29  ;;  %989 = vmatprep.subr.mxu1 %v2395_v30  ;;  %v2897_v29 = vld [vmem:[#allocation3 + $0x1e8] sm:$0xff]  ;;  %v2900_v30 = vld [vmem:[#allocation3 + $0x1f8] sm:$0xff] }
 0x35d   :  { %919 = vmatpush1.msra.mxu0 %v2399_v31  ;;  %990 = vmatpush1.msra.mxu1 %v2401_v32  ;;  %3719 = vst [vmem:[#allocation42_spill] sm:$0xff] %v2897_v29  ;;  %3720 = vst [vmem:[#allocation14_spill] sm:$0xff] %v2900_v30  ;;  %v724_v31 = vpop.permute.xlu1 %723  ;;  %v3721_v32 = vld [vmem:[#allocation37_spill] sm:$0xff] }
 0x35e   :  { %920 = vmatprep.subr.mxu0 %v2405_v33  ;;  %991 = vmatprep.subr.mxu1 %v2407_v34  ;;  %v726_v33 = vmul.f32 %v724_v31, %v3721_v32  ;;  %v3722_v34 = vld [vmem:[#allocation38_spill] sm:$0xff] }
 0x35f   :  { %921 = vmatpush1.msra.mxu0 %v2411_v35  ;;  %992 = vmatpush1.msra.mxu1 %v2413_v36  ;;  %v727_v35 = vmul.f32 %v724_v31, %v3722_v34  ;;  %v3723_v36 = vld [vmem:[#allocation39_spill] sm:$0xff] }
 0x360   :  { %922 = vmatprep.subr.mxu0 %v2417_v37  ;;  %993 = vmatprep.subr.mxu1 %v2419_v38  ;;  %v730_v37 = vadd.f32 %v726_v33, %v3723_v36  ;;  %v3724_v38 = vld [vmem:[#allocation40_spill] sm:$0xff]  ;;  %v2981_v33 = vld [vmem:[#allocation3 + $0x128] sm:$0xff] }
 0x361   :  { %923 = vmatpush1.msra.mxu0 %v2423_v39  ;;  %994 = vmatpush1.msra.mxu1 %v2425_v40  ;;  %v728_v39 = vmul.f32 %v724_v31, %v3724_v38 }
 0x362   :  { %924 = vmatprep.subr.mxu0 %v2429_v41  ;;  %995 = vmatprep.subr.mxu1 %v2431_v42  ;;  %v3725_v42 = vld [vmem:[#allocation41_spill] sm:$0xff] }
 0x363   :  { %925 = vmatpush1.msra.mxu0 %v2435_v43  ;;  %996 = vmatpush1.msra.mxu1 %v2437_v44  ;;  %v731_v43 = vadd.f32 %v727_v35, %v3725_v42  ;;  %v732_v59 = vadd.f32 %v728_v39, %v2639_v52  ;;  %v2984_v35 = vld [vmem:[#allocation3 + $0x138] sm:$0xff]  ;;  %v2990_v39 = vld [vmem:[#allocation3 + $0x130] sm:$0xff] }
 0x364   :  { %926 = vmatprep.subr.mxu0 %v2441_v45  ;;  %997 = vmatprep.subr.mxu1 %v3666_v55 }
 0x365   :  { %927 = vmatpush1.msra.mxu0 %v3667_v58  ;;  %998 = vmatpush1.msra.mxu1 %v3697_v7  ;;  %v729_v58 = vmul.f32 %v724_v31, %v2643_v3  ;;  %v2978_v31 = vld [vmem:[#allocation3 + $0x150] sm:$0xff] }
 0x366   :  { %928 = vmatprep.subr.mxu0 %v3698_v8  ;;  %999 = vmatprep.subr.mxu1 %v3699_v9  ;;  %v2915_v8 = vld [vmem:[#allocation3 + $0x1e0] sm:$0xff]  ;;  %v2918_v9 = vld [vmem:[#allocation3 + $0x1f0] sm:$0xff] }
 0x367   :  { %929 = vmatpush1.msra.mxu0 %v3700_v10  ;;  %1000 = vmatpush1.msra.mxu1 %v3701_v11  ;;  %v733_v6 = vadd.f32 %v729_v58, %v3665_v57  ;;  %v2924_v10 = vld [vmem:[#allocation3 + $0x1d8] sm:$0xff]  ;;  %v2927_v11 = vld [vmem:[#allocation3 + $0x1c0] sm:$0xff]  ;;  %v3017_v58 = vld [vmem:[#allocation3 + $0xc8] sm:$0xff] }
 0x368   :  { %930 = vmatprep.subr.mxu0 %v3702_v12  ;;  %1001 = vmatprep.subr.mxu1 %v3703_v13  ;;  %v2930_v12 = vld [vmem:[#allocation3 + $0x1d0] sm:$0xff]  ;;  %v2933_v13 = vld [vmem:[#allocation3 + $0x1a8] sm:$0xff] }
 0x369   :  { %931 = vmatpush1.msra.mxu0 %v3704_v14  ;;  %1002 = vmatpush1.msra.mxu1 %v3705_v15  ;;  %v2936_v14 = vld [vmem:[#allocation3 + $0x1b8] sm:$0xff]  ;;  %v2939_v15 = vld [vmem:[#allocation3 + $0x1a0] sm:$0xff] }
 0x36a   :  { %932 = vmatprep.subr.mxu0 %v3706_v16  ;;  %1003 = vmatprep.subr.mxu1 %v3707_v17  ;;  %v2942_v16 = vld [vmem:[#allocation3 + $0x1b0] sm:$0xff]  ;;  %v2945_v17 = vld [vmem:[#allocation3 + $0x188] sm:$0xff] }
 0x36b   :  { %933 = vmatpush1.msra.mxu0 %v3708_v18  ;;  %1004 = vmatpush1.msra.mxu1 %v3709_v19  ;;  %v2948_v18 = vld [vmem:[#allocation3 + $0x198] sm:$0xff]  ;;  %v2951_v19 = vld [vmem:[#allocation3 + $0x180] sm:$0xff] }
 0x36c   :  { %934 = vmatprep.subr.mxu0 %v3710_v20  ;;  %1005 = vmatprep.subr.mxu1 %v3711_v21  ;;  %v2954_v20 = vld [vmem:[#allocation3 + $0x190] sm:$0xff]  ;;  %v2957_v21 = vld [vmem:[#allocation3 + $0x168] sm:$0xff] }
 0x36d   :  { %935 = vmatpush1.msra.mxu0 %v3712_v22  ;;  %1006 = vmatpush1.msra.mxu1 %v3713_v23  ;;  %v2960_v22 = vld [vmem:[#allocation3 + $0x178] sm:$0xff]  ;;  %v2963_v23 = vld [vmem:[#allocation3 + $0x160] sm:$0xff] }
 0x36e   :  { %936 = vmatprep.subr.mxu0 %v3714_v24  ;;  %1007 = vmatprep.subr.mxu1 %v3715_v25  ;;  %v2966_v24 = vld [vmem:[#allocation3 + $0x170] sm:$0xff]  ;;  %v2969_v25 = vld [vmem:[#allocation3 + $0x148] sm:$0xff] }
 0x36f   :  { %937 = vmatpush1.msra.mxu0 %v3716_v26  ;;  %970 = vmatprep.mubr.f32.mxu0 %v3717_v27  ;;  %v2972_v26 = vld [vmem:[#allocation3 + $0x158] sm:$0xff] }
 0x370   :  { %1008 = vmatpush1.msra.mxu1 %v3718_v28  ;;  %1041 = vmatprep.mubr.f32.mxu1 %v3717_v27  ;;  %v2975_v28 = vld [vmem:[#allocation3 + $0x140] sm:$0xff] }
 0x371   :  { %1078 = vmatprep.subr.mxu0 %v2897_v29  ;;  %1149 = vmatprep.subr.mxu1 %v2900_v30 }
 0x410   :  { %v800_v40 = vpop.f32.mrf.mxu0  ;;  %v871_v44 = vpop.f32.mrf.mxu1 }
 0x411   :  { %v801_v41 = vadd.f32 %v800_v40, %v730_v37  ;;  %v872_v55 = vadd.f32 %v871_v44, %v732_v59  ;;  %v2987_v37 = vld [vmem:[#allocation3 + $0x120] sm:$0xff]  ;;  %v2993_v40 = vld [vmem:[#allocation3 + $0x108] sm:$0xff]  ;;  %v3002_v44 = vld [vmem:[#allocation3 + $0x110] sm:$0xff] }
 0x412   :  { %v802_v45 = vpop.f32.mrf.mxu0  ;;  %v873_v49 = vpop.f32.mrf.mxu1  ;;  %v3008_v59 = vld [vmem:[#allocation3 + $0xf8] sm:$0xff] }
 0x413   :  { %2043 = vtanh.f32 %v801_v41  ;;  %v803_v46 = vadd.f32 %v802_v45, %v731_v43  ;;  %v874_v1 = vadd.f32 %v873_v49, %v733_v6  ;;  %v2996_v41 = vld [vmem:[#allocation3 + $0x118] sm:$0xff]  ;;  %v2999_v43 = vld [vmem:[#allocation3 + $0x100] sm:$0xff]  ;;  %v3005_v45 = vld [vmem:[#allocation3 + $0xe8] sm:$0xff] }
 0x414   :  { %v3020_v49 = vld [vmem:[#allocation3 + $0xd8] sm:$0xff]  ;;  %v3023_v6 = vld [vmem:[#allocation3 + $0xc0] sm:$0xff] }
 0x415   :  { %2045 = vtanh.f32 %v803_v46  ;;  %v3011_v46 = vld [vmem:[#allocation3 + $0xe0] sm:$0xff] }
 0x416   :  { %2047 = vtanh.f32 %v872_v55  ;;  %v3014_v55 = vld [vmem:[#allocation3 + $0xf0] sm:$0xff] }
 0x417   :  { %2049 = vtanh.f32 %v874_v1  ;;  %v3026_v1 = vld [vmem:[#allocation3 + $0xd0] sm:$0xff] }
 0x420   :  { %v2044_v4 = vpop.eup %2043 }
 0x421   :  { %v880_v5 = vmul.f32 0.5, %v2044_v4  ;;  %v3029_v4 = vld [vmem:[#allocation3 + $0xa8] sm:$0xff] }
 0x422   :  { %v2046_v2 = vpop.eup %2045 }
 0x423   :  { %v881_v47 = vadd.f32 0.5, %v880_v5  ;;  %v882_v53 = vmul.f32 0.5, %v2046_v2  ;;  %v2048_v60 = vpop.eup %2047  ;;  %v3032_v5 = vld [vmem:[#allocation3 + $0xb8] sm:$0xff]  ;;  %v3035_v2 = vld [vmem:[#allocation3 + $0xa0] sm:$0xff] }
 0x424   :  { %v2050_v50 = vpop.eup %2049 }
 0x425   :  { %v883_v62 = vadd.f32 0.5, %v882_v53  ;;  %v887_v51 = vmul.f32 %v2048_v60, %v881_v47  ;;  %v884_v61 = vmul.f32 0.5, %v2050_v50  ;;  %v3038_v47 = vld [vmem:[#allocation3 + $0xb0] sm:$0xff]  ;;  %v3041_v53 = vld [vmem:[#allocation3 + $0x88] sm:$0xff]  ;;  %v3047_v60 = vld [vmem:[#allocation3 + $0x80] sm:$0xff] }
 0x426   :  { %3726 = vst [vmem:[#allocation15_spill] sm:$0xff] %v3038_v47  ;;  %3727 = vst [vmem:[#allocation12_spill] sm:$0xff] %v3041_v53  ;;  %v3056_v50 = vld [vmem:[#allocation3 + $0x78] sm:$0xff] }
 0x427   :  { %v886_v0 = vmul.f32 %v883_v62, %v2830_v48  ;;  %v885_v56 = vadd.f32 0.5, %v884_v61  ;;  %v2921_v48 = vld [vmem:[#allocation3 + $0x1c8] sm:$0xff]  ;;  %v3044_v62 = vld [vmem:[#allocation3 + $0x98] sm:$0xff]  ;;  %3729 = vst [vmem:[#allocation16_spill] sm:$0xff] %v3047_v60  ;;  %3732 = vst [vmem:[#allocation19_spill] sm:$0xff] %v3056_v50 }
 0x428   :  { %3728 = vst [vmem:[#allocation13_spill] sm:$0xff] %v3044_v62  ;;  %v3059_v61 = vld [vmem:[#allocation3 + $0x60] sm:$0xff] }
 0x429   :  { %v2912_v54 = vadd.f32 %v887_v51, %v886_v0  ;;  %v3050_v0 = vld [vmem:[#allocation3 + $0x90] sm:$0xff]  ;;  %v3053_v51 = vld [vmem:[#allocation3 + $0x68] sm:$0xff]  ;;  %3733 = vst [vmem:[#allocation20_spill] sm:$0xff] %v3059_v61 }
 0x42a   :  { %3730 = vst [vmem:[#allocation17_spill] sm:$0xff] %v3050_v0  ;;  %3731 = vst [vmem:[#allocation18_spill] sm:$0xff] %v3053_v51 }
 0x42b   :  { %2051 = vtanh.f32 %v2912_v54 }
 0x438   :  { %v2052_v63 = vpop.eup %2051 }
 0x439   :  { %v890_v7 = vmul.f32 %v2052_v63, %v885_v56  ;;  %v3062_v56 = vld [vmem:[#allocation3 + $0x70] sm:$0xff]  ;;  %v3065_v63 = vld [vmem:[#allocation3 + $0x48] sm:$0xff] }
 0x43a   :  { %3734 = vst [vmem:[#allocation21_spill] sm:$0xff] %v3062_v56  ;;  %3735 = vst [vmem:[#allocation22_spill] sm:$0xff] %v3065_v63 }
 0x43b   :  { %971 = vmatmul.mubr.f32.vlgmr.msra.gmra.mxu0 %v890_v7  ;;  %1042 = vmatmul.mubr.f32.vlgmr.msra.gmra.mxu1 %v890_v7  ;;  %v3068_v7 = vld [vmem:[#allocation3 + $0x58] sm:$0xff] }
 0x43c   :  { %1079 = vmatpush1.msra.mxu0 %v2915_v8  ;;  %1150 = vmatpush1.msra.mxu1 %v2918_v9  ;;  %3736 = vst [vmem:[#allocation23_spill] sm:$0xff] %v3068_v7 }
 0x43d   :  { %1080 = vmatprep.subr.mxu0 %v2921_v48  ;;  %1151 = vmatprep.subr.mxu1 %v2924_v10 }
 0x43e   :  { %1081 = vmatpush1.msra.mxu0 %v2927_v11  ;;  %1152 = vmatpush1.msra.mxu1 %v2930_v12 }
 0x43f   :  { %1082 = vmatprep.subr.mxu0 %v2933_v13  ;;  %1153 = vmatprep.subr.mxu1 %v2936_v14 }
 0x440   :  { %1083 = vmatpush1.msra.mxu0 %v2939_v15  ;;  %1154 = vmatpush1.msra.mxu1 %v2942_v16 }
 0x441   :  { %1084 = vmatprep.subr.mxu0 %v2945_v17  ;;  %1155 = vmatprep.subr.mxu1 %v2948_v18 }
 0x442   :  { %1085 = vmatpush1.msra.mxu0 %v2951_v19  ;;  %1156 = vmatpush1.msra.mxu1 %v2954_v20 }
 0x443   :  { %1086 = vmatprep.subr.mxu0 %v2957_v21  ;;  %1157 = vmatprep.subr.mxu1 %v2960_v22 }
 0x444   :  { %1087 = vmatpush1.msra.mxu0 %v2963_v23  ;;  %1158 = vmatpush1.msra.mxu1 %v2966_v24 }
 0x445   :  { %1088 = vmatprep.subr.mxu0 %v2969_v25  ;;  %1159 = vmatprep.subr.mxu1 %v2972_v26 }
 0x446   :  { %1089 = vmatpush1.msra.mxu0 %v2975_v28  ;;  %1160 = vmatpush1.msra.mxu1 %v2978_v31 }
 0x447   :  { %1090 = vmatprep.subr.mxu0 %v2981_v33  ;;  %1161 = vmatprep.subr.mxu1 %v2984_v35 }
 0x448   :  { %1091 = vmatpush1.msra.mxu0 %v2987_v37  ;;  %1162 = vmatpush1.msra.mxu1 %v2990_v39 }
 0x449   :  { %1092 = vmatprep.subr.mxu0 %v2993_v40  ;;  %1163 = vmatprep.subr.mxu1 %v2996_v41 }
 0x44a   :  { %1093 = vmatpush1.msra.mxu0 %v2999_v43  ;;  %1164 = vmatpush1.msra.mxu1 %v3002_v44 }
 0x44b   :  { %1094 = vmatprep.subr.mxu0 %v3005_v45  ;;  %1165 = vmatprep.subr.mxu1 %v3008_v59 }
 0x44c   :  { %1095 = vmatpush1.msra.mxu0 %v3011_v46  ;;  %1166 = vmatpush1.msra.mxu1 %v3014_v55 }
 0x44d   :  { %1096 = vmatprep.subr.mxu0 %v3017_v58  ;;  %1167 = vmatprep.subr.mxu1 %v3020_v49 }
 0x44e   :  { %1097 = vmatpush1.msra.mxu0 %v3023_v6  ;;  %1168 = vmatpush1.msra.mxu1 %v3026_v1 }
 0x44f   :  { %1098 = vmatprep.subr.mxu0 %v3029_v4  ;;  %1169 = vmatprep.subr.mxu1 %v3032_v5 }
 0x450   :  { %1099 = vmatpush1.msra.mxu0 %v3035_v2  ;;  %1170 = vmatpush1.msra.mxu1 %v3038_v47 }
 0x451   :  { %1100 = vmatprep.subr.mxu0 %v3041_v53  ;;  %1171 = vmatprep.subr.mxu1 %v3044_v62 }
 0x452   :  { %1101 = vmatpush1.msra.mxu0 %v3047_v60  ;;  %1172 = vmatpush1.msra.mxu1 %v3050_v0 }
 0x453   :  { %1102 = vmatprep.subr.mxu0 %v3053_v51  ;;  %1173 = vmatprep.subr.mxu1 %v3056_v50  ;;  %v3071_v51 = vld [vmem:[#allocation3 + $0x40] sm:$0xff]  ;;  %v3074_v50 = vld [vmem:[#allocation3 + $0x50] sm:$0xff] }
 0x454   :  { %1103 = vmatpush1.msra.mxu0 %v3059_v61  ;;  %1174 = vmatpush1.msra.mxu1 %v3062_v56  ;;  %3737 = vst [vmem:[#allocation24_spill] sm:$0xff] %v3071_v51  ;;  %3738 = vst [vmem:[#allocation25_spill] sm:$0xff] %v3074_v50  ;;  %v3077_v61 = vld [vmem:[#allocation3 + $0x28] sm:$0xff]  ;;  %v3080_v56 = vld [vmem:[#allocation3 + $0x38] sm:$0xff] }
 0x455   :  { %1104 = vmatprep.subr.mxu0 %v3065_v63  ;;  %1175 = vmatprep.subr.mxu1 %v3068_v7  ;;  %3739 = vst [vmem:[#allocation26_spill] sm:$0xff] %v3077_v61  ;;  %3740 = vst [vmem:[#allocation27_spill] sm:$0xff] %v3080_v56  ;;  %v3083_v63 = vld [vmem:[#allocation3 + $0x20] sm:$0xff]  ;;  %v3086_v7 = vld [vmem:[#allocation3 + $0x30] sm:$0xff] }
 0x456   :  { %1105 = vmatpush1.msra.mxu0 %v3071_v51  ;;  %1176 = vmatpush1.msra.mxu1 %v3074_v50  ;;  %3741 = vst [vmem:[#allocation28_spill] sm:$0xff] %v3083_v63  ;;  %3742 = vst [vmem:[#allocation29_spill] sm:$0xff] %v3086_v7  ;;  %v3089_v51 = vld [vmem:[#allocation3 + $0x8] sm:$0xff]  ;;  %v3092_v50 = vld [vmem:[#allocation3 + $0x18] sm:$0xff] }
 0x457   :  { %1106 = vmatprep.subr.mxu0 %v3077_v61  ;;  %1177 = vmatprep.subr.mxu1 %v3080_v56  ;;  %3743 = vst [vmem:[#allocation30_spill] sm:$0xff] %v3089_v51  ;;  %3744 = vst [vmem:[#allocation31_spill] sm:$0xff] %v3092_v50  ;;  %v3095_v61 = vld [vmem:[#allocation3] sm:$0xff]  ;;  %v3099_v56 = vld [vmem:[#allocation3 + $0x10] sm:$0xff] }
 0x458   :  { %1107 = vmatpush1.msra.mxu0 %v3083_v63  ;;  %1178 = vmatpush1.msra.mxu1 %v3086_v7  ;;  %3745 = vst [vmem:[#allocation32_spill] sm:$0xff] %v3095_v61  ;;  %3746 = vst [vmem:[#allocation33_spill] sm:$0xff] %v3099_v56 }
 0x459   :  { %1108 = vmatprep.subr.mxu0 %v3089_v51  ;;  %1179 = vmatprep.subr.mxu1 %v3092_v50  ;;  %v896_v51 = vpop.permute.xlu1 %895 }
 0x45a   :  { %1109 = vmatpush1.msra.mxu0 %v3095_v61  ;;  %1142 = vmatprep.mubr.f32.mxu0 %v3717_v27  ;;  %v898_v7 = vmul.f32 %v896_v51, %v3721_v32  ;;  %v899_v50 = vmul.f32 %v896_v51, %v3722_v34  ;;  %v900_v61 = vmul.f32 %v896_v51, %v3724_v38 }
 0x45b   :  { %1180 = vmatpush1.msra.mxu1 %v3099_v56  ;;  %1213 = vmatprep.mubr.f32.mxu1 %v3717_v27  ;;  %v901_v32 = vmul.f32 %v896_v51, %v2643_v3  ;;  %v3752_v51 = vld [vmem:[#allocation18_spill] sm:$0xff] }
 0x45c   :  { %1250 = vmatprep.subr.mxu0 %v2897_v29  ;;  %1321 = vmatprep.subr.mxu1 %v2900_v30  ;;  %v902_v63 = vadd.f32 %v898_v7, %v3723_v36  ;;  %v903_v62 = vadd.f32 %v899_v50, %v3725_v42  ;;  %v904_v29 = vadd.f32 %v900_v61, %v2639_v52 }
 0x45d   :  { %v905_v7 = vadd.f32 %v901_v32, %v3665_v57 }
 0x4fb   :  { %v972_v0 = vpop.f32.mrf.mxu0  ;;  %v1043_v56 = vpop.f32.mrf.mxu1 }
 0x4fc   :  { %v973_v60 = vadd.f32 %v972_v0, %v902_v63  ;;  %v1044_v30 = vadd.f32 %v1043_v56, %v904_v29  ;;  %v3753_v56 = vld [vmem:[#allocation19_spill] sm:$0xff] }
 0x4fd   :  { %v974_v53 = vpop.f32.mrf.mxu0  ;;  %v1045_v34 = vpop.f32.mrf.mxu1 }
 0x4fe   :  { %2053 = vtanh.f32 %v973_v60  ;;  %v975_v27 = vadd.f32 %v974_v53, %v903_v62  ;;  %v1046_v36 = vadd.f32 %v1045_v34, %v905_v7  ;;  %v3754_v7 = vld [vmem:[#allocation20_spill] sm:$0xff] }
 0x500   :  { %2055 = vtanh.f32 %v975_v27 }
 0x501   :  { %2057 = vtanh.f32 %v1044_v30 }
 0x502   :  { %2059 = vtanh.f32 %v1046_v36  ;;  %v3747_v36 = vld [vmem:[#allocation15_spill] sm:$0xff] }
 0x50b   :  { %v2054_v38 = vpop.eup %2053 }
 0x50c   :  { %v1052_v47 = vmul.f32 0.5, %v2054_v38  ;;  %v3748_v38 = vld [vmem:[#allocation12_spill] sm:$0xff] }
 0x50d   :  { %v2056_v0 = vpop.eup %2055 }
 0x50e   :  { %v1053_v63 = vadd.f32 0.5, %v1052_v47  ;;  %v1054_v50 = vmul.f32 0.5, %v2056_v0  ;;  %v2058_v60 = vpop.eup %2057  ;;  %v3751_v47 = vld [vmem:[#allocation17_spill] sm:$0xff] }
 0x50f   :  { %v2060_v27 = vpop.eup %2059  ;;  %v3755_v0 = vld [vmem:[#allocation21_spill] sm:$0xff] }
 0x510   :  { %v1055_v42 = vadd.f32 0.5, %v1054_v50  ;;  %v1059_v53 = vmul.f32 %v2058_v60, %v1053_v63  ;;  %v1056_v30 = vmul.f32 0.5, %v2060_v27  ;;  %v3756_v63 = vld [vmem:[#allocation22_spill] sm:$0xff]  ;;  %v3757_v50 = vld [vmem:[#allocation23_spill] sm:$0xff]  ;;  %v3758_v60 = vld [vmem:[#allocation24_spill] sm:$0xff] }
 0x511   :  { %v3761_v27 = vld [vmem:[#allocation27_spill] sm:$0xff] }
 0x512   :  { %v1058_v61 = vmul.f32 %v1055_v42, %v2912_v54  ;;  %v1057_v62 = vadd.f32 0.5, %v1056_v30  ;;  %v3749_v42 = vld [vmem:[#allocation13_spill] sm:$0xff]  ;;  %v3750_v54 = vld [vmem:[#allocation16_spill] sm:$0xff] }
 0x513   :  { %v3762_v30 = vld [vmem:[#allocation28_spill] sm:$0xff] }
 0x514   :  { %v3114_v29 = vadd.f32 %v1059_v53, %v1058_v61  ;;  %v3759_v61 = vld [vmem:[#allocation25_spill] sm:$0xff]  ;;  %v3760_v53 = vld [vmem:[#allocation26_spill] sm:$0xff] }
 0x516   :  { %2061 = vtanh.f32 %v3114_v29 }
 0x523   :  { %v2062_v32 = vpop.eup %2061 }
 0x524   :  { %v1062_v34 = vmul.f32 %v2062_v32, %v1057_v62  ;;  %v3763_v62 = vld [vmem:[#allocation29_spill] sm:$0xff]  ;;  %v3764_v32 = vld [vmem:[#allocation30_spill] sm:$0xff] }
 0x526   :  { %1143 = vmatmul.mubr.f32.vlgmr.msra.gmra.mxu0 %v1062_v34  ;;  %1214 = vmatmul.mubr.f32.vlgmr.msra.gmra.mxu1 %v1062_v34  ;;  %v3765_v34 = vld [vmem:[#allocation31_spill] sm:$0xff] }
 0x527   :  { %1251 = vmatpush1.msra.mxu0 %v2915_v8  ;;  %1322 = vmatpush1.msra.mxu1 %v2918_v9 }
 0x528   :  { %1252 = vmatprep.subr.mxu0 %v2921_v48  ;;  %1323 = vmatprep.subr.mxu1 %v2924_v10 }
 0x529   :  { %1253 = vmatpush1.msra.mxu0 %v2927_v11  ;;  %1324 = vmatpush1.msra.mxu1 %v2930_v12 }
 0x52a   :  { %1254 = vmatprep.subr.mxu0 %v2933_v13  ;;  %1325 = vmatprep.subr.mxu1 %v2936_v14 }
 0x52b   :  { %1255 = vmatpush1.msra.mxu0 %v2939_v15  ;;  %1326 = vmatpush1.msra.mxu1 %v2942_v16 }
 0x52c   :  { %1256 = vmatprep.subr.mxu0 %v2945_v17  ;;  %1327 = vmatprep.subr.mxu1 %v2948_v18 }
 0x52d   :  { %1257 = vmatpush1.msra.mxu0 %v2951_v19  ;;  %1328 = vmatpush1.msra.mxu1 %v2954_v20 }
 0x52e   :  { %1258 = vmatprep.subr.mxu0 %v2957_v21  ;;  %1329 = vmatprep.subr.mxu1 %v2960_v22 }
 0x52f   :  { %1259 = vmatpush1.msra.mxu0 %v2963_v23  ;;  %1330 = vmatpush1.msra.mxu1 %v2966_v24 }
 0x530   :  { %1260 = vmatprep.subr.mxu0 %v2969_v25  ;;  %1331 = vmatprep.subr.mxu1 %v2972_v26 }
 0x531   :  { %1261 = vmatpush1.msra.mxu0 %v2975_v28  ;;  %1332 = vmatpush1.msra.mxu1 %v2978_v31 }
 0x532   :  { %1262 = vmatprep.subr.mxu0 %v2981_v33  ;;  %1333 = vmatprep.subr.mxu1 %v2984_v35 }
 0x533   :  { %1263 = vmatpush1.msra.mxu0 %v2987_v37  ;;  %1334 = vmatpush1.msra.mxu1 %v2990_v39 }
 0x534   :  { %1264 = vmatprep.subr.mxu0 %v2993_v40  ;;  %1335 = vmatprep.subr.mxu1 %v2996_v41 }
 0x535   :  { %1265 = vmatpush1.msra.mxu0 %v2999_v43  ;;  %1336 = vmatpush1.msra.mxu1 %v3002_v44 }
 0x536   :  { %1266 = vmatprep.subr.mxu0 %v3005_v45  ;;  %1337 = vmatprep.subr.mxu1 %v3008_v59 }
 0x537   :  { %1267 = vmatpush1.msra.mxu0 %v3011_v46  ;;  %1338 = vmatpush1.msra.mxu1 %v3014_v55 }
 0x538   :  { %1268 = vmatprep.subr.mxu0 %v3017_v58  ;;  %1339 = vmatprep.subr.mxu1 %v3020_v49 }
 0x539   :  { %1269 = vmatpush1.msra.mxu0 %v3023_v6  ;;  %1340 = vmatpush1.msra.mxu1 %v3026_v1 }
 0x53a   :  { %1270 = vmatprep.subr.mxu0 %v3029_v4  ;;  %1341 = vmatprep.subr.mxu1 %v3032_v5 }
 0x53b   :  { %1271 = vmatpush1.msra.mxu0 %v3035_v2  ;;  %1342 = vmatpush1.msra.mxu1 %v3747_v36 }
 0x53c   :  { %1272 = vmatprep.subr.mxu0 %v3748_v38  ;;  %1343 = vmatprep.subr.mxu1 %v3749_v42 }
 0x53d   :  { %1273 = vmatpush1.msra.mxu0 %v3750_v54  ;;  %1344 = vmatpush1.msra.mxu1 %v3751_v47  ;;  %v3775_v54 = vld [vmem:[#allocation41_spill] sm:$0xff] }
 0x53e   :  { %1274 = vmatprep.subr.mxu0 %v3752_v51  ;;  %1345 = vmatprep.subr.mxu1 %v3753_v56 }
 0x53f   :  { %1275 = vmatpush1.msra.mxu0 %v3754_v7  ;;  %1346 = vmatpush1.msra.mxu1 %v3755_v0  ;;  %v3766_v0 = vld [vmem:[#allocation32_spill] sm:$0xff] }
 0x540   :  { %1276 = vmatprep.subr.mxu0 %v3756_v63  ;;  %1347 = vmatprep.subr.mxu1 %v3757_v50  ;;  %v3767_v63 = vmov 0.0   ;;  %v3768_v50 = vld [vmem:[#allocation33_spill] sm:$0xff] }
 0x541   :  { %1277 = vmatpush1.msra.mxu0 %v3758_v60  ;;  %1348 = vmatpush1.msra.mxu1 %v3759_v61  ;;  %v3769_v61 = vld [vmem:[#allocation42_spill] sm:$0xff] }
 0x542   :  { %1278 = vmatprep.subr.mxu0 %v3760_v53  ;;  %1349 = vmatprep.subr.mxu1 %v3761_v27  ;;  %v3770_v53 = vld [vmem:[#allocation14_spill] sm:$0xff]  ;;  %v1068_v27 = vpop.permute.xlu0 %1067 }
 0x543   :  { %1279 = vmatpush1.msra.mxu0 %v3762_v30  ;;  %1350 = vmatpush1.msra.mxu1 %v3763_v62  ;;  %v3771_v30 = vld [vmem:[#allocation37_spill] sm:$0xff]  ;;  %v3772_v62 = vld [vmem:[#allocation38_spill] sm:$0xff] }
 0x544   :  { %1280 = vmatprep.subr.mxu0 %v3764_v32  ;;  %1351 = vmatprep.subr.mxu1 %v3765_v34  ;;  %v1070_v60 = vmul.f32 %v1068_v27, %v3771_v30  ;;  %v1071_v7 = vmul.f32 %v1068_v27, %v3772_v62  ;;  %v3773_v32 = vld [vmem:[#allocation39_spill] sm:$0xff]  ;;  %v3774_v34 = vld [vmem:[#allocation40_spill] sm:$0xff]  ;;  %v1073_v30 = vmul.f32 %v1068_v27, %v2643_v3 }
 0x545   :  { %1281 = vmatpush1.msra.mxu0 %v3766_v0  ;;  %1314 = vmatprep.mubr.f32.mxu0 %v3767_v63  ;;  %v1072_v51 = vmul.f32 %v1068_v27, %v3774_v34 }
 0x546   :  { %1352 = vmatpush1.msra.mxu1 %v3768_v50  ;;  %1385 = vmatprep.mubr.f32.mxu1 %v3767_v63  ;;  %v1074_v56 = vadd.f32 %v1070_v60, %v3773_v32  ;;  %v1075_v42 = vadd.f32 %v1071_v7, %v3775_v54  ;;  %v1077_v60 = vadd.f32 %v1073_v30, %v3665_v57  ;;  %v3779_v30 = vld [vmem:[#allocation16_spill] sm:$0xff] }
 0x547   :  { %1422 = vmatprep.subr.mxu0 %v3769_v61  ;;  %1493 = vmatprep.subr.mxu1 %v3770_v53  ;;  %v1076_v61 = vadd.f32 %v1072_v51, %v2639_v52 }
 0x5e6   :  { %v1144_v0 = vpop.f32.mrf.mxu0  ;;  %v1215_v50 = vpop.f32.mrf.mxu1 }
 0x5e7   :  { %v1145_v47 = vadd.f32 %v1144_v0, %v1074_v56  ;;  %v1216_v53 = vadd.f32 %v1215_v50, %v1076_v61 }
 0x5e8   :  { %v1146_v38 = vpop.f32.mrf.mxu0  ;;  %v1217_v62 = vpop.f32.mrf.mxu1 }
 0x5e9   :  { %2063 = vtanh.f32 %v1145_v47  ;;  %v1147_v63 = vadd.f32 %v1146_v38, %v1075_v42  ;;  %v1218_v32 = vadd.f32 %v1217_v62, %v1077_v60  ;;  %v3780_v62 = vld [vmem:[#allocation17_spill] sm:$0xff]  ;;  %v3783_v60 = vld [vmem:[#allocation20_spill] sm:$0xff] }
 0x5eb   :  { %2065 = vtanh.f32 %v1147_v63 }
 0x5ec   :  { %2067 = vtanh.f32 %v1216_v53 }
 0x5ed   :  { %2069 = vtanh.f32 %v1218_v32  ;;  %v3781_v32 = vld [vmem:[#allocation18_spill] sm:$0xff] }
 0x5f6   :  { %v2064_v34 = vpop.eup %2063 }
 0x5f7   :  { %v1224_v36 = vmul.f32 0.5, %v2064_v34  ;;  %v3782_v34 = vld [vmem:[#allocation19_spill] sm:$0xff] }
 0x5f8   :  { %v2066_v56 = vpop.eup %2065 }
 0x5f9   :  { %v1225_v0 = vadd.f32 0.5, %v1224_v36  ;;  %v1226_v7 = vmul.f32 0.5, %v2066_v56  ;;  %v2068_v47 = vpop.eup %2067  ;;  %v3777_v36 = vld [vmem:[#allocation12_spill] sm:$0xff]  ;;  %v3784_v56 = vld [vmem:[#allocation21_spill] sm:$0xff] }
 0x5fa   :  { %v2070_v63 = vpop.eup %2069 }
 0x5fb   :  { %v1227_v54 = vadd.f32 0.5, %v1226_v7  ;;  %v1231_v38 = vmul.f32 %v2068_v47, %v1225_v0  ;;  %v1228_v50 = vmul.f32 0.5, %v2070_v63  ;;  %v3785_v0 = vld [vmem:[#allocation22_spill] sm:$0xff]  ;;  %v3786_v7 = vld [vmem:[#allocation23_spill] sm:$0xff]  ;;  %v3787_v47 = vld [vmem:[#allocation24_spill] sm:$0xff] }
 0x5fc   :  { %v3790_v63 = vld [vmem:[#allocation27_spill] sm:$0xff] }
 0x5fd   :  { %v1230_v51 = vmul.f32 %v1227_v54, %v3114_v29  ;;  %v1229_v61 = vadd.f32 0.5, %v1228_v50  ;;  %v3776_v29 = vld [vmem:[#allocation15_spill] sm:$0xff]  ;;  %v3778_v54 = vld [vmem:[#allocation13_spill] sm:$0xff]  ;;  %v3791_v50 = vld [vmem:[#allocation28_spill] sm:$0xff] }
 0x5ff   :  { %v3192_v42 = vadd.f32 %v1231_v38, %v1230_v51  ;;  %v3788_v51 = vld [vmem:[#allocation25_spill] sm:$0xff]  ;;  %v3789_v38 = vld [vmem:[#allocation26_spill] sm:$0xff] }
 0x601   :  { %2071 = vtanh.f32 %v3192_v42 }
 0x60e   :  { %v2072_v53 = vpop.eup %2071 }
 0x60f   :  { %v1234_v27 = vmul.f32 %v2072_v53, %v1229_v61  ;;  %v3792_v61 = vld [vmem:[#allocation29_spill] sm:$0xff]  ;;  %v3793_v53 = vld [vmem:[#allocation30_spill] sm:$0xff] }
 0x611   :  { %1315 = vmatmul.mubr.f32.vlgmr.msra.gmra.mxu0 %v1234_v27  ;;  %1386 = vmatmul.mubr.f32.vlgmr.msra.gmra.mxu1 %v1234_v27  ;;  %v3794_v27 = vld [vmem:[#allocation31_spill] sm:$0xff] }
 0x612   :  { %1423 = vmatpush1.msra.mxu0 %v2915_v8  ;;  %1494 = vmatpush1.msra.mxu1 %v2918_v9 }
 0x613   :  { %1424 = vmatprep.subr.mxu0 %v2921_v48  ;;  %1495 = vmatprep.subr.mxu1 %v2924_v10 }
 0x614   :  { %1425 = vmatpush1.msra.mxu0 %v2927_v11  ;;  %1496 = vmatpush1.msra.mxu1 %v2930_v12 }
 0x615   :  { %1426 = vmatprep.subr.mxu0 %v2933_v13  ;;  %1497 = vmatprep.subr.mxu1 %v2936_v14 }
 0x616   :  { %1427 = vmatpush1.msra.mxu0 %v2939_v15  ;;  %1498 = vmatpush1.msra.mxu1 %v2942_v16 }
 0x617   :  { %1428 = vmatprep.subr.mxu0 %v2945_v17  ;;  %1499 = vmatprep.subr.mxu1 %v2948_v18 }
 0x618   :  { %1429 = vmatpush1.msra.mxu0 %v2951_v19  ;;  %1500 = vmatpush1.msra.mxu1 %v2954_v20 }
 0x619   :  { %1430 = vmatprep.subr.mxu0 %v2957_v21  ;;  %1501 = vmatprep.subr.mxu1 %v2960_v22 }
 0x61a   :  { %1431 = vmatpush1.msra.mxu0 %v2963_v23  ;;  %1502 = vmatpush1.msra.mxu1 %v2966_v24 }
 0x61b   :  { %1432 = vmatprep.subr.mxu0 %v2969_v25  ;;  %1503 = vmatprep.subr.mxu1 %v2972_v26 }
 0x61c   :  { %1433 = vmatpush1.msra.mxu0 %v2975_v28  ;;  %1504 = vmatpush1.msra.mxu1 %v2978_v31 }
 0x61d   :  { %1434 = vmatprep.subr.mxu0 %v2981_v33  ;;  %1505 = vmatprep.subr.mxu1 %v2984_v35 }
 0x61e   :  { %1435 = vmatpush1.msra.mxu0 %v2987_v37  ;;  %1506 = vmatpush1.msra.mxu1 %v2990_v39 }
 0x61f   :  { %1436 = vmatprep.subr.mxu0 %v2993_v40  ;;  %1507 = vmatprep.subr.mxu1 %v2996_v41 }
 0x620   :  { %1437 = vmatpush1.msra.mxu0 %v2999_v43  ;;  %1508 = vmatpush1.msra.mxu1 %v3002_v44 }
 0x621   :  { %1438 = vmatprep.subr.mxu0 %v3005_v45  ;;  %1509 = vmatprep.subr.mxu1 %v3008_v59 }
 0x622   :  { %1439 = vmatpush1.msra.mxu0 %v3011_v46  ;;  %1510 = vmatpush1.msra.mxu1 %v3014_v55 }
 0x623   :  { %1440 = vmatprep.subr.mxu0 %v3017_v58  ;;  %1511 = vmatprep.subr.mxu1 %v3020_v49 }
 0x624   :  { %1441 = vmatpush1.msra.mxu0 %v3023_v6  ;;  %1512 = vmatpush1.msra.mxu1 %v3026_v1 }
 0x625   :  { %1442 = vmatprep.subr.mxu0 %v3029_v4  ;;  %1513 = vmatprep.subr.mxu1 %v3032_v5 }
 0x626   :  { %1443 = vmatpush1.msra.mxu0 %v3035_v2  ;;  %1514 = vmatpush1.msra.mxu1 %v3776_v29 }
 0x627   :  { %1444 = vmatprep.subr.mxu0 %v3777_v36  ;;  %1515 = vmatprep.subr.mxu1 %v3778_v54 }
 0x628   :  { %1445 = vmatpush1.msra.mxu0 %v3779_v30  ;;  %1516 = vmatpush1.msra.mxu1 %v3780_v62  ;;  %v3804_v30 = vld [vmem:[#allocation41_spill] sm:$0xff] }
 0x629   :  { %1446 = vmatprep.subr.mxu0 %v3781_v32  ;;  %1517 = vmatprep.subr.mxu1 %v3782_v34 }
 0x62a   :  { %1447 = vmatpush1.msra.mxu0 %v3783_v60  ;;  %1518 = vmatpush1.msra.mxu1 %v3784_v56  ;;  %v3795_v56 = vld [vmem:[#allocation32_spill] sm:$0xff] }
 0x62b   :  { %1448 = vmatprep.subr.mxu0 %v3785_v0  ;;  %1519 = vmatprep.subr.mxu1 %v3786_v7  ;;  %v3796_v0 = vmov 0.0   ;;  %v3797_v7 = vld [vmem:[#allocation33_spill] sm:$0xff] }
 0x62c   :  { %1449 = vmatpush1.msra.mxu0 %v3787_v47  ;;  %1520 = vmatpush1.msra.mxu1 %v3788_v51  ;;  %v3798_v51 = vld [vmem:[#allocation42_spill] sm:$0xff] }
 0x62d   :  { %1450 = vmatprep.subr.mxu0 %v3789_v38  ;;  %1521 = vmatprep.subr.mxu1 %v3790_v63  ;;  %v3799_v38 = vld [vmem:[#allocation14_spill] sm:$0xff]  ;;  %v1240_v63 = vpop.permute.xlu1 %1239 }
 0x62e   :  { %1451 = vmatpush1.msra.mxu0 %v3791_v50  ;;  %1522 = vmatpush1.msra.mxu1 %v3792_v61  ;;  %v3800_v50 = vld [vmem:[#allocation37_spill] sm:$0xff]  ;;  %v3801_v61 = vld [vmem:[#allocation38_spill] sm:$0xff] }
 0x62f   :  { %1452 = vmatprep.subr.mxu0 %v3793_v53  ;;  %1523 = vmatprep.subr.mxu1 %v3794_v27  ;;  %v1242_v47 = vmul.f32 %v1240_v63, %v3800_v50  ;;  %v1243_v60 = vmul.f32 %v1240_v63, %v3801_v61  ;;  %v3802_v53 = vld [vmem:[#allocation39_spill] sm:$0xff]  ;;  %v3803_v27 = vld [vmem:[#allocation40_spill] sm:$0xff]  ;;  %v1245_v50 = vmul.f32 %v1240_v63, %v2643_v3 }
 0x630   :  { %1453 = vmatpush1.msra.mxu0 %v3795_v56  ;;  %1486 = vmatprep.mubr.f32.mxu0 %v3796_v0  ;;  %v1244_v32 = vmul.f32 %v1240_v63, %v3803_v27 }
 0x631   :  { %1524 = vmatpush1.msra.mxu1 %v3797_v7  ;;  %1557 = vmatprep.mubr.f32.mxu1 %v3796_v0  ;;  %v1246_v34 = vadd.f32 %v1242_v47, %v3802_v53  ;;  %v1247_v54 = vadd.f32 %v1243_v60, %v3804_v30  ;;  %v1249_v47 = vadd.f32 %v1245_v50, %v3665_v57  ;;  %v3808_v50 = vld [vmem:[#allocation16_spill] sm:$0xff] }
 0x632   :  { %1579 = vmatprep.subr.mxu0 %v3798_v51  ;;  %1650 = vmatprep.subr.mxu1 %v3799_v38  ;;  %v1248_v51 = vadd.f32 %v1244_v32, %v2639_v52 }
 0x6d1   :  { %v1316_v56 = vpop.f32.mrf.mxu0  ;;  %v1387_v7 = vpop.f32.mrf.mxu1 }
 0x6d2   :  { %v1317_v62 = vadd.f32 %v1316_v56, %v1246_v34  ;;  %v1388_v38 = vadd.f32 %v1387_v7, %v1248_v51 }
 0x6d3   :  { %v1318_v36 = vpop.f32.mrf.mxu0  ;;  %v1389_v61 = vpop.f32.mrf.mxu1 }
 0x6d4   :  { %2073 = vtanh.f32 %v1317_v62  ;;  %v1319_v0 = vadd.f32 %v1318_v36, %v1247_v54  ;;  %v1390_v53 = vadd.f32 %v1389_v61, %v1249_v47  ;;  %v3809_v61 = vld [vmem:[#allocation17_spill] sm:$0xff]  ;;  %v3812_v47 = vld [vmem:[#allocation20_spill] sm:$0xff] }
 0x6d6   :  { %2075 = vtanh.f32 %v1319_v0 }
 0x6d7   :  { %2077 = vtanh.f32 %v1388_v38 }
 0x6d8   :  { %2079 = vtanh.f32 %v1390_v53  ;;  %v3810_v53 = vld [vmem:[#allocation18_spill] sm:$0xff] }
 0x6e1   :  { %v2074_v27 = vpop.eup %2073 }
 0x6e2   :  { %v1396_v29 = vmul.f32 0.5, %v2074_v27  ;;  %v3811_v27 = vld [vmem:[#allocation19_spill] sm:$0xff] }
 0x6e3   :  { %v2076_v34 = vpop.eup %2075 }
 0x6e4   :  { %v1397_v56 = vadd.f32 0.5, %v1396_v29  ;;  %v1398_v60 = vmul.f32 0.5, %v2076_v34  ;;  %v2078_v62 = vpop.eup %2077  ;;  %v3806_v29 = vld [vmem:[#allocation12_spill] sm:$0xff]  ;;  %v3813_v34 = vld [vmem:[#allocation21_spill] sm:$0xff] }
 0x6e5   :  { %v2080_v0 = vpop.eup %2079 }
 0x6e6   :  { %v1399_v30 = vadd.f32 0.5, %v1398_v60  ;;  %v1403_v36 = vmul.f32 %v2078_v62, %v1397_v56  ;;  %v1400_v7 = vmul.f32 0.5, %v2080_v0  ;;  %v3814_v56 = vld [vmem:[#allocation22_spill] sm:$0xff]  ;;  %v3815_v60 = vld [vmem:[#allocation23_spill] sm:$0xff]  ;;  %v3816_v62 = vld [vmem:[#allocation24_spill] sm:$0xff] }
 0x6e7   :  { %v3819_v0 = vld [vmem:[#allocation27_spill] sm:$0xff] }
 0x6e8   :  { %v1402_v32 = vmul.f32 %v1399_v30, %v3192_v42  ;;  %v1401_v51 = vadd.f32 0.5, %v1400_v7  ;;  %v3805_v42 = vld [vmem:[#allocation15_spill] sm:$0xff]  ;;  %v3807_v30 = vld [vmem:[#allocation13_spill] sm:$0xff]  ;;  %v3820_v7 = vld [vmem:[#allocation28_spill] sm:$0xff] }
 0x6ea   :  { %v3270_v54 = vadd.f32 %v1403_v36, %v1402_v32  ;;  %v3817_v32 = vld [vmem:[#allocation25_spill] sm:$0xff]  ;;  %v3818_v36 = vld [vmem:[#allocation26_spill] sm:$0xff] }
 0x6ec   :  { %2081 = vtanh.f32 %v3270_v54 }
 0x6f9   :  { %v2082_v38 = vpop.eup %2081 }
 0x6fa   :  { %v1406_v63 = vmul.f32 %v2082_v38, %v1401_v51  ;;  %v3821_v51 = vld [vmem:[#allocation29_spill] sm:$0xff]  ;;  %v3822_v38 = vld [vmem:[#allocation30_spill] sm:$0xff] }
 0x6fc   :  { %1487 = vmatmul.mubr.f32.vlgmr.msra.gmra.mxu0 %v1406_v63  ;;  %1558 = vmatmul.mubr.f32.vlgmr.msra.gmra.mxu1 %v1406_v63  ;;  %v3823_v63 = vld [vmem:[#allocation31_spill] sm:$0xff] }
 0x6fd   :  { %1580 = vmatpush1.msra.mxu0 %v2915_v8  ;;  %1651 = vmatpush1.msra.mxu1 %v2918_v9 }
 0x6fe   :  { %1581 = vmatprep.subr.mxu0 %v2921_v48  ;;  %1652 = vmatprep.subr.mxu1 %v2924_v10 }
 0x6ff   :  { %1582 = vmatpush1.msra.mxu0 %v2927_v11  ;;  %1653 = vmatpush1.msra.mxu1 %v2930_v12 }
 0x700   :  { %1583 = vmatprep.subr.mxu0 %v2933_v13  ;;  %1654 = vmatprep.subr.mxu1 %v2936_v14 }
 0x701   :  { %1584 = vmatpush1.msra.mxu0 %v2939_v15  ;;  %1655 = vmatpush1.msra.mxu1 %v2942_v16 }
 0x702   :  { %1585 = vmatprep.subr.mxu0 %v2945_v17  ;;  %1656 = vmatprep.subr.mxu1 %v2948_v18 }
 0x703   :  { %1586 = vmatpush1.msra.mxu0 %v2951_v19  ;;  %1657 = vmatpush1.msra.mxu1 %v2954_v20 }
 0x704   :  { %1587 = vmatprep.subr.mxu0 %v2957_v21  ;;  %1658 = vmatprep.subr.mxu1 %v2960_v22 }
 0x705   :  { %1588 = vmatpush1.msra.mxu0 %v2963_v23  ;;  %1659 = vmatpush1.msra.mxu1 %v2966_v24 }
 0x706   :  { %1589 = vmatprep.subr.mxu0 %v2969_v25  ;;  %1660 = vmatprep.subr.mxu1 %v2972_v26 }
 0x707   :  { %1590 = vmatpush1.msra.mxu0 %v2975_v28  ;;  %1661 = vmatpush1.msra.mxu1 %v2978_v31 }
 0x708   :  { %1591 = vmatprep.subr.mxu0 %v2981_v33  ;;  %1662 = vmatprep.subr.mxu1 %v2984_v35 }
 0x709   :  { %1592 = vmatpush1.msra.mxu0 %v2987_v37  ;;  %1663 = vmatpush1.msra.mxu1 %v2990_v39 }
 0x70a   :  { %1593 = vmatprep.subr.mxu0 %v2993_v40  ;;  %1664 = vmatprep.subr.mxu1 %v2996_v41 }
 0x70b   :  { %1594 = vmatpush1.msra.mxu0 %v2999_v43  ;;  %1665 = vmatpush1.msra.mxu1 %v3002_v44 }
 0x70c   :  { %1595 = vmatprep.subr.mxu0 %v3005_v45  ;;  %1666 = vmatprep.subr.mxu1 %v3008_v59 }
 0x70d   :  { %1596 = vmatpush1.msra.mxu0 %v3011_v46  ;;  %1667 = vmatpush1.msra.mxu1 %v3014_v55 }
 0x70e   :  { %1597 = vmatprep.subr.mxu0 %v3017_v58  ;;  %1668 = vmatprep.subr.mxu1 %v3020_v49 }
 0x70f   :  { %1598 = vmatpush1.msra.mxu0 %v3023_v6  ;;  %1669 = vmatpush1.msra.mxu1 %v3026_v1 }
 0x710   :  { %1599 = vmatprep.subr.mxu0 %v3029_v4  ;;  %1670 = vmatprep.subr.mxu1 %v3032_v5 }
 0x711   :  { %1600 = vmatpush1.msra.mxu0 %v3035_v2  ;;  %1671 = vmatpush1.msra.mxu1 %v3805_v42 }
 0x712   :  { %1601 = vmatprep.subr.mxu0 %v3806_v29  ;;  %1672 = vmatprep.subr.mxu1 %v3807_v30 }
 0x713   :  { %1602 = vmatpush1.msra.mxu0 %v3808_v50  ;;  %1673 = vmatpush1.msra.mxu1 %v3809_v61  ;;  %v3833_v50 = vld [vmem:[#allocation41_spill] sm:$0xff] }
 0x714   :  { %1603 = vmatprep.subr.mxu0 %v3810_v53  ;;  %1674 = vmatprep.subr.mxu1 %v3811_v27 }
 0x715   :  { %1604 = vmatpush1.msra.mxu0 %v3812_v47  ;;  %1675 = vmatpush1.msra.mxu1 %v3813_v34  ;;  %v3824_v34 = vld [vmem:[#allocation32_spill] sm:$0xff] }
 0x716   :  { %1605 = vmatprep.subr.mxu0 %v3814_v56  ;;  %1676 = vmatprep.subr.mxu1 %v3815_v60  ;;  %v3825_v56 = vmov 0.0   ;;  %v3826_v60 = vld [vmem:[#allocation33_spill] sm:$0xff] }
 0x717   :  { %1606 = vmatpush1.msra.mxu0 %v3816_v62  ;;  %1677 = vmatpush1.msra.mxu1 %v3817_v32  ;;  %v3827_v32 = vld [vmem:[#allocation42_spill] sm:$0xff] }
 0x718   :  { %1607 = vmatprep.subr.mxu0 %v3818_v36  ;;  %1678 = vmatprep.subr.mxu1 %v3819_v0  ;;  %v3828_v36 = vld [vmem:[#allocation14_spill] sm:$0xff]  ;;  %v1412_v0 = vpop.permute.xlu0 %1411 }
 0x719   :  { %1608 = vmatpush1.msra.mxu0 %v3820_v7  ;;  %1679 = vmatpush1.msra.mxu1 %v3821_v51  ;;  %v3829_v7 = vld [vmem:[#allocation37_spill] sm:$0xff]  ;;  %v3830_v51 = vld [vmem:[#allocation38_spill] sm:$0xff] }
 0x71a   :  { %1609 = vmatprep.subr.mxu0 %v3822_v38  ;;  %1680 = vmatprep.subr.mxu1 %v3823_v63  ;;  %v1414_v62 = vmul.f32 %v1412_v0, %v3829_v7  ;;  %v1415_v47 = vmul.f32 %v1412_v0, %v3830_v51  ;;  %v3831_v38 = vld [vmem:[#allocation39_spill] sm:$0xff]  ;;  %v3832_v63 = vld [vmem:[#allocation40_spill] sm:$0xff]  ;;  %v1417_v7 = vmul.f32 %v1412_v0, %v2643_v3 }
 0x71b   :  { %1610 = vmatpush1.msra.mxu0 %v3824_v34  ;;  %1643 = vmatprep.mubr.f32.mxu0 %v3825_v56  ;;  %v1416_v53 = vmul.f32 %v1412_v0, %v3832_v63 }
 0x71c   :  { %1681 = vmatpush1.msra.mxu1 %v3826_v60  ;;  %1714 = vmatprep.mubr.f32.mxu1 %v3825_v56  ;;  %v1418_v27 = vadd.f32 %v1414_v62, %v3831_v38  ;;  %v1419_v30 = vadd.f32 %v1415_v47, %v3833_v50  ;;  %v1421_v62 = vadd.f32 %v1417_v7, %v3665_v57 }
 0x71d   :  { %1741 = vmatprep.subr.mxu0 %v3827_v32  ;;  %1812 = vmatprep.subr.mxu1 %v3828_v36  ;;  %v1420_v32 = vadd.f32 %v1416_v53, %v2639_v52 }
 0x7bc   :  { %v1488_v34 = vpop.f32.mrf.mxu0  ;;  %v1559_v60 = vpop.f32.mrf.mxu1 }
 0x7bd   :  { %v1489_v61 = vadd.f32 %v1488_v34, %v1418_v27  ;;  %v1560_v36 = vadd.f32 %v1559_v60, %v1420_v32 }
 0x7be   :  { %v1490_v29 = vpop.f32.mrf.mxu0  ;;  %v1561_v51 = vpop.f32.mrf.mxu1 }
 0x7bf   :  { %2083 = vtanh.f32 %v1489_v61  ;;  %v1491_v56 = vadd.f32 %v1490_v29, %v1419_v30  ;;  %v1562_v38 = vadd.f32 %v1561_v51, %v1421_v62 }
 0x7c1   :  { %2085 = vtanh.f32 %v1491_v56 }
 0x7c2   :  { %2087 = vtanh.f32 %v1560_v36 }
 0x7c3   :  { %2089 = vtanh.f32 %v1562_v38 }
 0x7cc   :  { %v2084_v63 = vpop.eup %2083 }
 0x7cd   :  { %v1568_v42 = vmul.f32 0.5, %v2084_v63 }
 0x7ce   :  { %v2086_v27 = vpop.eup %2085 }
 0x7cf   :  { %v1569_v34 = vadd.f32 0.5, %v1568_v42  ;;  %v1570_v47 = vmul.f32 0.5, %v2086_v27  ;;  %v2088_v61 = vpop.eup %2087 }
 0x7d0   :  { %v2090_v3 = vpop.eup %2089 }
 0x7d1   :  { %v1571_v50 = vadd.f32 0.5, %v1570_v47  ;;  %v1575_v29 = vmul.f32 %v2088_v61, %v1569_v34  ;;  %v1572_v56 = vmul.f32 0.5, %v2090_v3 }
 0x7d3   :  { %v1574_v53 = vmul.f32 %v1571_v50, %v3270_v54  ;;  %v1573_v60 = vadd.f32 0.5, %v1572_v56 }
 0x7d5   :  { %v3348_v30 = vadd.f32 %v1575_v29, %v1574_v53 }
 0x7d7   :  { %2091 = vtanh.f32 %v3348_v30 }
 0x7e4   :  { %v2092_v0 = vpop.eup %2091 }
 0x7e5   :  { %v3351_v32 = vmul.f32 %v2092_v0, %v1573_v60 }
 0x7e7   :  { %1644 = vmatmul.mubr.f32.vlgmr.msra.gmra.mxu0 %v3351_v32  ;;  %1715 = vmatmul.mubr.f32.vlgmr.msra.gmra.mxu1 %v3351_v32 }
 0x7e8   :  { %1742 = vmatpush1.msra.mxu0 %v2915_v8  ;;  %1813 = vmatpush1.msra.mxu1 %v2918_v9  ;;  %v3834_v8 = vld [vmem:[#allocation15_spill] sm:$0xff]  ;;  %v3835_v9 = vld [vmem:[#allocation12_spill] sm:$0xff] }
 0x7e9   :  { %1743 = vmatprep.subr.mxu0 %v2921_v48  ;;  %1814 = vmatprep.subr.mxu1 %v2924_v10  ;;  %v3836_v48 = vld [vmem:[#allocation13_spill] sm:$0xff]  ;;  %v3837_v10 = vld [vmem:[#allocation16_spill] sm:$0xff] }
 0x7ea   :  { %1744 = vmatpush1.msra.mxu0 %v2927_v11  ;;  %1815 = vmatpush1.msra.mxu1 %v2930_v12  ;;  %v3838_v11 = vld [vmem:[#allocation17_spill] sm:$0xff]  ;;  %v3839_v12 = vld [vmem:[#allocation18_spill] sm:$0xff] }
 0x7eb   :  { %1745 = vmatprep.subr.mxu0 %v2933_v13  ;;  %1816 = vmatprep.subr.mxu1 %v2936_v14  ;;  %v3840_v13 = vld [vmem:[#allocation19_spill] sm:$0xff]  ;;  %v3841_v14 = vld [vmem:[#allocation20_spill] sm:$0xff] }
 0x7ec   :  { %1746 = vmatpush1.msra.mxu0 %v2939_v15  ;;  %1817 = vmatpush1.msra.mxu1 %v2942_v16  ;;  %v3842_v15 = vld [vmem:[#allocation21_spill] sm:$0xff]  ;;  %v3843_v16 = vld [vmem:[#allocation22_spill] sm:$0xff] }
 0x7ed   :  { %1747 = vmatprep.subr.mxu0 %v2945_v17  ;;  %1818 = vmatprep.subr.mxu1 %v2948_v18  ;;  %v3844_v17 = vld [vmem:[#allocation23_spill] sm:$0xff]  ;;  %v3845_v18 = vld [vmem:[#allocation24_spill] sm:$0xff] }
 0x7ee   :  { %1748 = vmatpush1.msra.mxu0 %v2951_v19  ;;  %1819 = vmatpush1.msra.mxu1 %v2954_v20  ;;  %v3846_v19 = vld [vmem:[#allocation25_spill] sm:$0xff]  ;;  %v3847_v20 = vld [vmem:[#allocation26_spill] sm:$0xff] }
 0x7ef   :  { %1749 = vmatprep.subr.mxu0 %v2957_v21  ;;  %1820 = vmatprep.subr.mxu1 %v2960_v22  ;;  %v3848_v21 = vld [vmem:[#allocation27_spill] sm:$0xff]  ;;  %v3849_v22 = vld [vmem:[#allocation28_spill] sm:$0xff] }
 0x7f0   :  { %1750 = vmatpush1.msra.mxu0 %v2963_v23  ;;  %1821 = vmatpush1.msra.mxu1 %v2966_v24  ;;  %v3850_v23 = vld [vmem:[#allocation29_spill] sm:$0xff]  ;;  %v3851_v24 = vld [vmem:[#allocation30_spill] sm:$0xff] }
 0x7f1   :  { %1751 = vmatprep.subr.mxu0 %v2969_v25  ;;  %1822 = vmatprep.subr.mxu1 %v2972_v26  ;;  %v3852_v25 = vld [vmem:[#allocation31_spill] sm:$0xff]  ;;  %v3853_v26 = vld [vmem:[#allocation32_spill] sm:$0xff] }
 0x7f2   :  { %1752 = vmatpush1.msra.mxu0 %v2975_v28  ;;  %1823 = vmatpush1.msra.mxu1 %v2978_v31  ;;  %v3854_v28 = vmov 0.0   ;;  %v3855_v31 = vld [vmem:[#allocation33_spill] sm:$0xff] }
 0x7f3   :  { %1753 = vmatprep.subr.mxu0 %v2981_v33  ;;  %1824 = vmatprep.subr.mxu1 %v2984_v35  ;;  %v3856_v35 = vld [vmem:[#allocation39_spill] sm:$0xff] }
 0x7f4   :  { %1754 = vmatpush1.msra.mxu0 %v2987_v37  ;;  %1825 = vmatpush1.msra.mxu1 %v2990_v39 }
 0x7f5   :  { %1755 = vmatprep.subr.mxu0 %v2993_v40  ;;  %1826 = vmatprep.subr.mxu1 %v2996_v41  ;;  %v3857_v41 = vld [vmem:[#allocation41_spill] sm:$0xff] }
 0x7f6   :  { %1756 = vmatpush1.msra.mxu0 %v2999_v43  ;;  %1827 = vmatpush1.msra.mxu1 %v3002_v44 }
 0x7f7   :  { %1757 = vmatprep.subr.mxu0 %v3005_v45  ;;  %1828 = vmatprep.subr.mxu1 %v3008_v59 }
 0x7f8   :  { %1758 = vmatpush1.msra.mxu0 %v3011_v46  ;;  %1829 = vmatpush1.msra.mxu1 %v3014_v55 }
 0x7f9   :  { %1759 = vmatprep.subr.mxu0 %v3017_v58  ;;  %1830 = vmatprep.subr.mxu1 %v3020_v49 }
 0x7fa   :  { %1760 = vmatpush1.msra.mxu0 %v3023_v6  ;;  %1831 = vmatpush1.msra.mxu1 %v3026_v1 }
 0x7fb   :  { %1761 = vmatprep.subr.mxu0 %v3029_v4  ;;  %1832 = vmatprep.subr.mxu1 %v3032_v5  ;;  %v3858_v4 = vld [vmem:[#allocation43_spill] sm:$0xff] }
 0x7fc   :  { %1762 = vmatpush1.msra.mxu0 %v3035_v2  ;;  %1833 = vmatpush1.msra.mxu1 %v3834_v8  ;;  %vm1736_vm5 = vcmp.ge.s32.totalorder %v3858_v4, 32  ;;  %vm1737_vm6 = vcmp.lt.s32.totalorder %v3858_v4, 96  ;;  %vm1898_vm8 = vcmp.ge.s32.totalorder %v3858_v4, 64 }
 0x7fd   :  { %1763 = vmatprep.subr.mxu0 %v3835_v9  ;;  %1834 = vmatprep.subr.mxu1 %v3836_v48  ;;  %vm1738_vm7 = vmand %vm1736_vm5, %vm1737_vm6 }
 0x7fe   :  { %1764 = vmatpush1.msra.mxu0 %v3837_v10  ;;  %1835 = vmatpush1.msra.mxu1 %v3838_v11  ;;  %vm1899_vm9 = vmand %vm1898_vm8, %vm1737_vm6 }
 0x7ff   :  { %1765 = vmatprep.subr.mxu0 %v3839_v12  ;;  %1836 = vmatprep.subr.mxu1 %v3840_v13 }
 0x800   :  { %1766 = vmatpush1.msra.mxu0 %v3841_v14  ;;  %1837 = vmatpush1.msra.mxu1 %v3842_v15 }
 0x801   :  { %1767 = vmatprep.subr.mxu0 %v3843_v16  ;;  %1838 = vmatprep.subr.mxu1 %v3844_v17  ;;  %v1999_v17 = vld [vmem:[%s3467_s6] ss:$0 sm:$0xff]  ;;  %s1956_s6 = sshll.u32 %s2250_s30, 4  ;;  %s1957_s6 = int_to_ptr.vmem [resolvable:$true] %s1956_s6 }
 0x802   :  { %1768 = vmatpush1.msra.mxu0 %v3845_v18  ;;  %1839 = vmatpush1.msra.mxu1 %v3846_v19  ;;  %s2197_s13 = scalar_lea.vmem %s1957_s6, 192  ;;  %p2202_p6 = scmp.lt.s32.totalorder %s1957_s6, %s1957_s6 }
 0x803   :  { %1769 = vmatprep.subr.mxu0 %v3847_v20  ;;  %1840 = vmatprep.subr.mxu1 %v3848_v21  ;;  %p2198_p5 = scmp.ne.s32.totalorder %s1957_s6, %s2197_s13  ;;  %p2203_p7 = scmp.lt.s32.totalorder %s2197_s13, %s2197_s13 }
 0x804   :  { %1770 = vmatpush1.msra.mxu0 %v3849_v22  ;;  %1841 = vmatpush1.msra.mxu1 %v3850_v23 }
 0x805   :  { %1771 = vmatprep.subr.mxu0 %v3851_v24  ;;  %1842 = vmatprep.subr.mxu1 %v3852_v25  ;;  %p2204_p8 = por %p2203_p7, %p2202_p6 }
 0x806   :  { %1772 = vmatpush1.msra.mxu0 %v3853_v26  ;;  %1805 = vmatprep.mubr.f32.mxu0 %v3854_v28 }
 0x807   :  { %1843 = vmatpush1.msra.mxu1 %v3855_v31  ;;  %1876 = vmatprep.mubr.f32.mxu1 %v3854_v28  ;;  %p2205_p9 = pnand %p2204_p8, %p2198_p5 }
 0x8a7   :  { %v1645_v33 = vpop.f32.mrf.mxu0  ;;  %v1716_v39 = vpop.f32.mrf.mxu1 }
 0x8a8   :  { %v1646_v37 = vadd.f32 %v1645_v33, %v3856_v35  ;;  %v1717_v44 = vadd.f32 %v1716_v39, %v2639_v52 }
 0x8a9   :  { %v1647_v40 = vpop.f32.mrf.mxu0  ;;  %v1718_v45 = vpop.f32.mrf.mxu1 }
 0x8aa   :  { %2093 = vtanh.f32 %v1646_v37  ;;  %v1648_v43 = vadd.f32 %v1647_v40, %v3857_v41  ;;  %v1719_v59 = vadd.f32 %v1718_v45, %v3665_v57 }
 0x8ac   :  { %2095 = vtanh.f32 %v1648_v43 }
 0x8ad   :  { %2097 = vtanh.f32 %v1717_v44 }
 0x8ae   :  { %2099 = vtanh.f32 %v1719_v59 }
 0x8b7   :  { %v2094_v46 = vpop.eup %2093 }
 0x8b8   :  { %v1725_v55 = vmul.f32 0.5, %v2094_v46 }
 0x8b9   :  { %v2096_v58 = vpop.eup %2095 }
 0x8ba   :  { %v1726_v49 = vadd.f32 0.5, %v1725_v55  ;;  %v1727_v6 = vmul.f32 0.5, %v2096_v58  ;;  %v2098_v5 = vpop.eup %2097 }
 0x8bb   :  { %v2100_v38 = vpop.eup %2099 }
 0x8bc   :  { %v1728_v1 = vadd.f32 0.5, %v1727_v6  ;;  %v1732_v54 = vmul.f32 %v2098_v5, %v1726_v49  ;;  %v1729_v36 = vmul.f32 0.5, %v2100_v38 }
 0x8be   :  { %v1731_v2 = vmul.f32 %v1728_v1, %v3348_v30  ;;  %v1730_v7 = vadd.f32 0.5, %v1729_v36 }
 0x8c0   :  { %v1733_v42 = vadd.f32 %v1732_v54, %v1731_v2 }
 0x8c2   :  { %2101 = vtanh.f32 %v1733_v42  ;;  %v1740_v50 = vsel %vm1738_vm7, %v1733_v42, %v3348_v30 }
 0x8cf   :  { %v2102_v51 = vpop.eup %2101 }
 0x8d0   :  { %v1735_v62 = vmul.f32 %v2102_v51, %v1730_v7 }
 0x8d2   :  { %v1739_v63 = vsel %vm1738_vm7, %v1735_v62, %v3351_v32 }
 0x8d3   :  { %1806 = vmatmul.mubr.f32.vlgmr.msra.gmra.mxu0 %v1739_v63  ;;  %1877 = vmatmul.mubr.f32.vlgmr.msra.gmra.mxu1 %v1739_v63 }
 0x993   :  { %v1807_v27 = vpop.f32.mrf.mxu0  ;;  %v1878_v47 = vpop.f32.mrf.mxu1 }
 0x994   :  { %v1808_v34 = vadd.f32 %v1807_v27, %v3856_v35  ;;  %v1879_v29 = vadd.f32 %v1878_v47, %v2639_v52 }
 0x995   :  { %v1809_v61 = vpop.f32.mrf.mxu0  ;;  %v1880_v30 = vpop.f32.mrf.mxu1 }
 0x996   :  { %2103 = vtanh.f32 %v1808_v34  ;;  %v1810_v53 = vadd.f32 %v1809_v61, %v3857_v41  ;;  %v1881_v3 = vadd.f32 %v1880_v30, %v3665_v57 }
 0x998   :  { %2105 = vtanh.f32 %v1810_v53 }
 0x999   :  { %2107 = vtanh.f32 %v1879_v29 }
 0x99a   :  { %2109 = vtanh.f32 %v1881_v3 }
 0x9a3   :  { %v2104_v56 = vpop.eup %2103 }
 0x9a4   :  { %v1887_v60 = vmul.f32 0.5, %v2104_v56 }
 0x9a5   :  { %v2106_v0 = vpop.eup %2105 }
 0x9a6   :  { %v1888_v32 = vadd.f32 0.5, %v1887_v60  ;;  %v1889_v8 = vmul.f32 0.5, %v2106_v0  ;;  %v2108_v48 = vpop.eup %2107 }
 0x9a7   :  { %v2110_v57 = vpop.eup %2109 }
 0x9a8   :  { %v1890_v9 = vadd.f32 0.5, %v1889_v8  ;;  %v1894_v11 = vmul.f32 %v2108_v48, %v1888_v32  ;;  %v1891_v13 = vmul.f32 0.5, %v2110_v57 }
 0x9aa   :  { %v1893_v10 = vmul.f32 %v1890_v9, %v1740_v50  ;;  %v1892_v14 = vadd.f32 0.5, %v1891_v13 }
 0x9ac   :  { %v1895_v52 = vadd.f32 %v1894_v11, %v1893_v10 }
 0x9ae   :  { %2111 = vtanh.f32 %v1895_v52  ;;  %v1901_v12 = vsel %vm1899_vm9, %v1895_v52, %v1740_v50 }
 0x9af   :  { %1904 = vst.msk [vmem:[#allocation7] sm:$0xf] %vm1902_vm10, %v1901_v12 }
 0x9bb   :  { %v2112_v15 = vpop.eup %2111 }
 0x9bc   :  { %v1897_v16 = vmul.f32 %v2112_v15, %v1892_v14 }
 0x9be   :  { %v1900_v18 = vsel %vm1899_vm9, %v1897_v16, %v1739_v63 }
 0x9bf   :  { %1906 = vrot.lane.b32.xlu0 %v1900_v18, %s2249_s29  ;;  %1903 = vst.msk [vmem:[#allocation6] sm:$0xf] %vm1902_vm10, %v1900_v18  ;;  %v1934_v19 = vmul.f32 %v1999_v17, %v1900_v18 }
 0x9c1   :  { %v1936_v20 = vsel %vm1935_vm11, %v1934_v19, 0.0 }
 0x9c2   :  { %1937 = vadd.xlane.f32.xlu1 %v1936_v20 }
 0x9c3   :  { %1912 = vrot.lane.b32.xlu0 %v1901_v12, %s2249_s29 }
 0x9c7   :  { %1917 = vrot.lane.b32.xlu0 %v1900_v18, %s2248_s3 }
 0x9cb   :  { %1922 = vrot.lane.b32.xlu0 %v1901_v12, %s2248_s3 }
 0xa31   :  { %v1907_v21 = vpop.permute.xlu0 %1906 }
 0xa32   :  { %1910 = vst.msk [vmem:[#allocation6 + $0x4] sm:$0xf] %vm1902_vm10, %v1907_v21 }
 0xa35   :  { %v1913_v22 = vpop.permute.xlu0 %1912 }
 0xa36   :  { %1916 = vst.msk [vmem:[#allocation7 + $0x4] sm:$0xf] %vm1902_vm10, %v1913_v22 }
 0xa39   :  { %v1918_v23 = vpop.permute.xlu0 %1917 }
 0xa3a   :  { %1921 = vst.msk [vmem:[#allocation6 + $0x8] sm:$0xf] %vm1902_vm10, %v1918_v23 }
 0xa3b   :  { %2208 = shalt.err (!%p2205_p9)
}
 0xa3c   :  { %s2252_s14 = smov 4   ;;  %s2217_s17 = scalar_lea.vmem %s1969_s12, 192 }
 0xa3d   :  { %1962 = dma.vmem_to_hbm [thread:$0]  %s1957_s6, 192, %s3470_s9, [#allocation5], %s2248_s3, %s2248_s3, %s2252_s14   ;;  %v1923_v24 = vpop.permute.xlu0 %1922 }
 0xa3e   :  { %1926 = vst.msk [vmem:[#allocation7 + $0x8] sm:$0xf] %vm1902_vm10, %v1923_v24  ;;  %p2218_p10 = scmp.ne.s32.totalorder %s1969_s12, %s2217_s17  ;;  %p2222_p11 = scmp.lt.s32.totalorder %s1969_s12, %s1969_s12 }
 0xa3f   :  { %p2223_p12 = scmp.lt.s32.totalorder %s2217_s17, %s2217_s17 }
 0xa41   :  { %p2224_p13 = por %p2223_p12, %p2222_p11 }
 0xa43   :  { %p2225_p0 = pnand %p2224_p13, %p2218_p10 }
 0xa45   :  { %2228 = shalt.err (!%p2225_p0)
}
 0xa46   :  { %1974 = dma.vmem_to_hbm [thread:$0]  %s1969_s12, 192, %s3471_s10, [#allocation8], %s2248_s3, %s2248_s3, %s2252_s14   ;;  %v2000_v25 = vld [vmem:[#allocation2] ss:$0 sm:$0xff]  ;;  %vm1947_vm12 = vcmask 3072  }
 0xa4b   :  { %v1938_v26 = vpop.xlane.xlu1 %1937 }
 0xa4c   :  { %v1946_v28 = vadd.f32 %v2000_v25, %v1938_v26 }
 0xa4e   :  { %1948 = vst.msk [vmem:[%s3469_s8] sm:$0xf] %vm1947_vm12, %v1946_v28 }
 0xa4f   :  { %2239 = dma.done.wait [#allocation5], 192  }
 0xa50   :  { %2240 = vsyncadd [#allocation5], 4294967104 }
 0xa51   :  { %2241 = dma.done.wait [#allocation8], 192  }
 0xa52   :  { %2242 = vsyncadd [#allocation8], 4294967104 }
 0xa53   :  { %1983 = vsyncpa [#allocation4], 1 }
 0xa54   :  { %1984 = vsyncpa [#allocation5], 1 }
 0xa55   :  { %1985 = vsyncpa [#allocation8], 1 }

</bundles_post_ra>
